<compile_context>
chip_gen: v7x
topology: tpu7x:2x2x1
jax: 0.10.0
libtpu: 0.0.40
codegen_flags: <defaults>
</compile_context>

<pallas_src>
import functools

import jax
import jax.numpy as jnp
from jax import lax
from jax.experimental import pallas as pl
from jax.experimental.pallas import tpu as pltpu


NEG_SLOPE = 0.2             # LeakyReLU slope used by GATv2
ONE_MINUS_SLOPE = 1.0 - NEG_SLOPE
NEG_INF = -1e30             # additive softmax mask for non-edges

# Module configuration: GATReg(num_features=[8,16], out_channels=[8,8], heads=[2,2])
NUM_FEATURES = [8, 16]
OUT_CHANNELS = [8, 8]
HEADS = [2, 2]


def _dot_t(a, b):
    """a[m, k] . b[n, k]^T -> [m, n]  (rhs-contracted matmul, q@k.T pattern)."""
    return lax.dot_general(a, b, (((1,), (1,)), ((), ())),
                           preferred_element_type=jnp.float32)


def _make_gatreg_kernel(N):
    H1, H2 = HEADS
    C1, C2 = OUT_CHANNELS

    def softmax_rows(e):
        m = jnp.max(e, axis=-1, keepdims=True)
        p = jnp.exp(e - m)
        return p * pl.reciprocal(jnp.sum(p, axis=-1, keepdims=True), approx=True)

    def kernel(x_ref, ei_ref,
               wl1t_ref, wr1_ref, b1_ref, abd1_ref, a1_ref,
               wl2t_ref, wr2_ref, b2_ref, abd2_ref, a2_ref,
               wl3t_ref, wr3_ref, attb3_ref,
               out_ref, h1_ref, h2_ref):
        E = ei_ref.shape[1]

        # ---- additive adjacency mask, built once, shared by all layers ------
        # mask[i, j] = 0 if there is an edge j -> i, else -1e30.
        node_ids = lax.broadcasted_iota(jnp.int32, (N, E), 0)
        src_oh = (node_ids == ei_ref[0:1, :]).astype(jnp.float32)   # [N, E]
        dst_oh = (node_ids == ei_ref[1:2, :]).astype(jnp.float32)   # [N, E]
        deg = _dot_t(dst_oh, src_oh)                                # [N, N] edge counts
        mask = jnp.where(deg > 0.0, 0.0, NEG_INF)
        # NOTE: a node with no in-edges attends uniformly under the additive
        # mask; identical to the reference whenever self loops are present.

        def gatv2_concat_relu(x, wlt_ref, wr_ref, b_ref, abd_ref, a_ref,
                              out_vref, H, C):
            # target-side proj [N, H*C]; source-side proj transposed [H*C, N]
            xr = jnp.dot(x, wr_ref[...], preferred_element_type=jnp.float32)
            xlT = _dot_t(wlt_ref[...], x)
            # Rank-1 (linear) part of the score for ALL heads at once:
            #   slope * s term collapses to (a . x_l)[j] + (a . x_r)[i],
            #   computed on the MXU via a block-diagonal attention matrix.
            sl_all = jnp.dot(abd_ref[...], xlT,
                             preferred_element_type=jnp.float32)    # [H, N]
            sr_all = _dot_t(xr, abd_ref[...])                       # [N, H]
            for h in range(H):
                base = h * C
                # ReLU residual of LeakyReLU, accumulated per channel on
                # [N, N] 2-D tiles (source node j on lanes, target i sublanes).
                er = jnp.zeros((N, N), jnp.float32)
                for c in range(C):
                    a_c = a_ref[base + c]                   # SMEM scalar
                    row = xlT[base + c:base + c + 1, :]     # [1, N] source j
                    col = xr[:, base + c:base + c + 1]      # [N, 1] target i
                    er = er + a_c * jnp.maximum(col + row, 0.0)
                lin = sr_all[:, h:h + 1] + sl_all[h:h + 1, :]        # [N, N]
                e = NEG_SLOPE * lin + ONE_MINUS_SLOPE * er + mask
                alpha = softmax_rows(e)                              # [N, N]
                # out_i = sum_j alpha[i, j] * x_l[j]  (x_l taken from xlT)
                agg = _dot_t(alpha, xlT[base:base + C, :])           # [N, C]
                out_vref[:, base:base + C] = jnp.maximum(
                    agg + b_ref[:, base:base + C], 0.0)              # bias + ReLU

        # ---- layers 1 & 2 (heads=2, C=8, concat=True) ------------------------
        gatv2_concat_relu(x_ref[...], wl1t_ref, wr1_ref, b1_ref, abd1_ref,
                          a1_ref, h1_ref, H1, C1)
        gatv2_concat_relu(h1_ref[...], wl2t_ref, wr2_ref, b2_ref, abd2_ref,
                          a2_ref, h2_ref, H2, C2)

        # ---- final layer (heads=1, C=1, concat=False) + sigmoid --------------
        x3 = h2_ref[...]
        xl3 = _dot_t(wl3t_ref[...], x3)                     # [1, N]
        xr3 = jnp.dot(x3, wr3_ref[...],
                      preferred_element_type=jnp.float32)   # [N, 1]
        a3 = attb3_ref[0]
        b3 = attb3_ref[1]
        s = xr3 + xl3                                       # [N, N]
        e = a3 * (NEG_SLOPE * s
                  + ONE_MINUS_SLOPE * jnp.maximum(s, 0.0)) + mask
        alpha = softmax_rows(e)
        out_row = _dot_t(xl3, alpha) + b3                   # lane-dense [1, N]
        out_ref[...] = 1.0 / (1.0 + jnp.exp(-out_row))      # sigmoid

    return kernel


def init_gatv2_params(key, in_ch, out_ch, heads, concat):
    """Deterministic glorot-ish init, layouts pre-arranged for the kernel."""
    k1, k2, k3 = jax.random.split(key, 3)
    hc = heads * out_ch
    scale_w = (2.0 / (in_ch + hc)) ** 0.5
    scale_a = (2.0 / (out_ch + 1)) ** 0.5
    wl = (scale_w * jax.random.normal(k1, (in_ch, hc))).astype(jnp.float32)
    wr = (scale_w * jax.random.normal(k2, (in_ch, hc))).astype(jnp.float32)
    att = (scale_a * jax.random.normal(k3, (heads, out_ch))).astype(jnp.float32)
    if concat:
        # block-diagonal attention matrix: att_bd[h, g*C + c] = att[h, c] * (g == h)
        att_bd = (jnp.eye(heads, dtype=jnp.float32)[:, :, None]
                  * att[:, None, :]).reshape(heads, hc)
        return {"wl_t": wl.T,                          # [H*C, in_ch] (pre-transposed)
                "wr": wr,                              # [in_ch, H*C]
                "att": att.reshape(hc),                # [H*C]  -> SMEM scalars
                "att_bd": att_bd,                      # [H, H*C] -> VMEM (MXU rank-1 part)
                "bias": jnp.zeros((1, hc), jnp.float32)}
    # final layer: heads=1, out_ch=1 (mean over the single head == identity)
    return {"wl_t": wl.T,                              # [1, in_ch]
            "wr": wr,                                  # [in_ch, 1]
            "attb": jnp.concatenate([att.reshape(1),
                                     jnp.zeros((1,), jnp.float32)])}  # [a, bias]


def _cost_estimate(N, E):
    f0 = NUM_FEATURES[0]
    dims = [(f0, HEADS[0], OUT_CHANNELS[0]),
            (HEADS[0] * OUT_CHANNELS[0], HEADS[1], OUT_CHANNELS[1]),
            (HEADS[1] * OUT_CHANNELS[1], 1, 1)]
    flops = 2 * N * N * E                          # adjacency one-hot matmul
    weight_elems = 0
    for f_in, h, c in dims:
        hc = h * c
        flops += 4 * N * f_in * hc                 # two projection matmuls
        flops += 4 * N * hc * h                    # rank-1 score matmuls
        flops += h * (6 * c + 12) * N * N          # relu residual + softmax
        flops += h * 2 * N * N * c                 # alpha @ x_l aggregation
        weight_elems += 2 * f_in * hc + h * hc + 2 * hc
    transcendentals = (HEADS[0] + HEADS[1] + 2) * N * N
    bytes_accessed = 4 * (N * f0 + 2 * E + N + weight_elems)
    return pl.CostEstimate(flops=int(flops),
                           transcendentals=int(transcendentals),
                           bytes_accessed=int(bytes_accessed))


@functools.partial(jax.jit, static_argnames=("num_nodes",))
def gatreg_forward(x, edge_index, params, *, num_nodes):
    N = num_nodes
    E = edge_index.shape[1]
    p1, p2, p3 = params["gat1"], params["gat2"], params["finalGat"]
    D1 = HEADS[0] * OUT_CHANNELS[0]
    D2 = HEADS[1] * OUT_CHANNELS[1]

    vmem = pl.BlockSpec(memory_space=pltpu.MemorySpace.VMEM)
    smem = pl.BlockSpec(memory_space=pltpu.MemorySpace.SMEM)

    out_row = pl.pallas_call(
        _make_gatreg_kernel(N),
        out_shape=jax.ShapeDtypeStruct((1, N), jnp.float32),
        in_specs=[vmem, vmem,
                  vmem, vmem, vmem, vmem, smem,
                  vmem, vmem, vmem, vmem, smem,
                  vmem, vmem, smem],
        out_specs=vmem,
        scratch_shapes=[pltpu.VMEM((N, D1), jnp.float32),   # layer-1 activations
                        pltpu.VMEM((N, D2), jnp.float32)],  # layer-2 activations
        compiler_params=pltpu.CompilerParams(vmem_limit_bytes=4 * 1024 * 1024),
        cost_estimate=_cost_estimate(N, E),
    )(x, edge_index.astype(jnp.int32),
      p1["wl_t"], p1["wr"], p1["bias"], p1["att_bd"], p1["att"],
      p2["wl_t"], p2["wr"], p2["bias"], p2["att_bd"], p2["att"],
      p3["wl_t"], p3["wr"], p3["attb"])
    return out_row.reshape(num_nodes)   # matches out.view(x.shape[0])


if __name__ == "__main__":
    N = 16  # nodes
    key = jax.random.PRNGKey(0)
    kx, k1, k2, k3 = jax.random.split(key, 4)

    x = jax.random.normal(kx, (N, NUM_FEATURES[0]), dtype=jnp.float32)

    # Deterministic graph: ring edges + self loops (edge_index[0]=src, [1]=dst).
    nodes = jnp.arange(N, dtype=jnp.int32)
    src = jnp.concatenate([nodes, nodes])
    dst = jnp.concatenate([(nodes + 1) % N, nodes])
    edge_index = jnp.stack([src, dst], axis=0)   # [2, 32]

    params = {
        "gat1": init_gatv2_params(k1, NUM_FEATURES[0], OUT_CHANNELS[0], HEADS[0], True),
        "gat2": init_gatv2_params(k2, NUM_FEATURES[1], OUT_CHANNELS[1], HEADS[1], True),
        "finalGat": init_gatv2_params(k3, OUT_CHANNELS[-1] * HEADS[-1], 1, 1, False),
    }

    out = gatreg_forward(x, edge_index, params, num_nodes=N)
    out = jax.block_until_ready(out)

    assert out.shape == (N,)
    assert bool(jnp.all(jnp.isfinite(out)))
    assert bool(jnp.all((out >= 0.0) & (out <= 1.0)))  # sigmoid range
    print("KERNEL_OK")
</pallas_src>

<mosaic_0001>
module attributes {stable_mosaic.version = 11 : i64} {
  func.func @kernel(%arg0: memref<16x8xf32, #tpu.memory_space<vmem>>, %arg1: memref<2x32xi32, #tpu.memory_space<vmem>>, %arg2: memref<16x8xf32, #tpu.memory_space<vmem>>, %arg3: memref<8x16xf32, #tpu.memory_space<vmem>>, %arg4: memref<1x16xf32, #tpu.memory_space<vmem>>, %arg5: memref<2x16xf32, #tpu.memory_space<vmem>>, %arg6: memref<16xf32, #tpu.memory_space<smem>>, %arg7: memref<16x16xf32, #tpu.memory_space<vmem>>, %arg8: memref<16x16xf32, #tpu.memory_space<vmem>>, %arg9: memref<1x16xf32, #tpu.memory_space<vmem>>, %arg10: memref<2x16xf32, #tpu.memory_space<vmem>>, %arg11: memref<16xf32, #tpu.memory_space<smem>>, %arg12: memref<1x16xf32, #tpu.memory_space<vmem>>, %arg13: memref<16x1xf32, #tpu.memory_space<vmem>>, %arg14: memref<2xf32, #tpu.memory_space<smem>>, %arg15: memref<1x16xf32, #tpu.memory_space<vmem>>, %arg16: memref<16x16xf32, #tpu.memory_space<vmem>>, %arg17: memref<16x16xf32, #tpu.memory_space<vmem>>) attributes {dimension_semantics = [], scalar_prefetch = 0 : i64, scratch_operands = 2 : i64, tpu.core_type = #tpu.core_type<tc>} {
    %0 = tpu.iota {dimensions = array<i32: 0>} : vector<16x32xi32>
    %c0 = arith.constant 0 : index
    %c0_0 = arith.constant 0 : index
    %1 = vector.load %arg1[%c0, %c0_0] : memref<2x32xi32, #tpu.memory_space<vmem>>, vector<1x32xi32>
    %2 = vector.broadcast %1 : vector<1x32xi32> to vector<16x32xi32>
    %3 = arith.cmpi eq, %0, %2 : vector<16x32xi32>
    %4 = arith.extui %3 : vector<16x32xi1> to vector<16x32xi32>
    %5 = arith.sitofp %4 : vector<16x32xi32> to vector<16x32xf32>
    %c1 = arith.constant 1 : index
    %c0_1 = arith.constant 0 : index
    %6 = vector.load %arg1[%c1, %c0_1] : memref<2x32xi32, #tpu.memory_space<vmem>>, vector<1x32xi32>
    %7 = vector.broadcast %6 : vector<1x32xi32> to vector<16x32xi32>
    %8 = arith.cmpi eq, %0, %7 : vector<16x32xi32>
    %9 = arith.extui %8 : vector<16x32xi1> to vector<16x32xi32>
    %10 = arith.sitofp %9 : vector<16x32xi32> to vector<16x32xf32>
    %cst = arith.constant dense<0.000000e+00> : vector<16x16xf32>
    %11 = tpu.matmul %10, %5, %cst {dimension_numbers = #tpu.dot_dimension_numbers<[1], [1], [0], [0], [0, 0, 1, 0], [], []>} : vector<16x32xf32>, vector<16x32xf32>, vector<16x16xf32> -> vector<16x16xf32>
    %cst_2 = arith.constant 0.000000e+00 : f32
    %12 = vector.broadcast %cst_2 : f32 to vector<16x16xf32>
    %13 = arith.cmpf ogt, %11, %12 : vector<16x16xf32>
    %cst_3 = arith.constant 0.000000e+00 : f32
    %cst_4 = arith.constant -1.000000e+30 : f32
    %14 = vector.broadcast %cst_3 : f32 to vector<16x16xf32>
    %15 = vector.broadcast %cst_4 : f32 to vector<16x16xf32>
    %16 = arith.select %13, %14, %15 : vector<16x16xi1>, vector<16x16xf32>
    %c0_5 = arith.constant 0 : index
    %c0_6 = arith.constant 0 : index
    %17 = vector.load %arg0[%c0_5, %c0_6] : memref<16x8xf32, #tpu.memory_space<vmem>>, vector<16x8xf32>
    %c0_7 = arith.constant 0 : index
    %c0_8 = arith.constant 0 : index
    %18 = vector.load %arg3[%c0_7, %c0_8] : memref<8x16xf32, #tpu.memory_space<vmem>>, vector<8x16xf32>
    %cst_9 = arith.constant dense<0.000000e+00> : vector<16x16xf32>
    %19 = tpu.matmul %17, %18, %cst_9 {dimension_numbers = #tpu.dot_dimension_numbers<[1], [0], [0], [1], [0, 0, 1, 1], [], []>} : vector<16x8xf32>, vector<8x16xf32>, vector<16x16xf32> -> vector<16x16xf32>
    %c0_10 = arith.constant 0 : index
    %c0_11 = arith.constant 0 : index
    %20 = vector.load %arg2[%c0_10, %c0_11] : memref<16x8xf32, #tpu.memory_space<vmem>>, vector<16x8xf32>
    %cst_12 = arith.constant dense<0.000000e+00> : vector<16x16xf32>
    %21 = tpu.matmul %20, %17, %cst_12 {dimension_numbers = #tpu.dot_dimension_numbers<[1], [1], [0], [0], [0, 0, 1, 0], [], []>} : vector<16x8xf32>, vector<16x8xf32>, vector<16x16xf32> -> vector<16x16xf32>
    %c0_13 = arith.constant 0 : index
    %c0_14 = arith.constant 0 : index
    %22 = vector.load %arg5[%c0_13, %c0_14] : memref<2x16xf32, #tpu.memory_space<vmem>>, vector<2x16xf32>
    %cst_15 = arith.constant dense<0.000000e+00> : vector<2x16xf32>
    %23 = tpu.matmul %22, %21, %cst_15 {dimension_numbers = #tpu.dot_dimension_numbers<[1], [0], [0], [1], [0, 0, 1, 1], [], []>} : vector<2x16xf32>, vector<16x16xf32>, vector<2x16xf32> -> vector<2x16xf32>
    %c0_16 = arith.constant 0 : index
    %c0_17 = arith.constant 0 : index
    %24 = vector.load %arg5[%c0_16, %c0_17] : memref<2x16xf32, #tpu.memory_space<vmem>>, vector<2x16xf32>
    %cst_18 = arith.constant dense<0.000000e+00> : vector<16x2xf32>
    %25 = tpu.matmul %19, %24, %cst_18 {dimension_numbers = #tpu.dot_dimension_numbers<[1], [1], [0], [0], [0, 0, 1, 0], [], []>} : vector<16x16xf32>, vector<2x16xf32>, vector<16x2xf32> -> vector<16x2xf32>
    %cst_19 = arith.constant 0.000000e+00 : f32
    %26 = vector.broadcast %cst_19 : f32 to vector<16x16xf32>
    %c0_20 = arith.constant 0 : index
    %27 = memref.load %arg6[%c0_20] : memref<16xf32, #tpu.memory_space<smem>>
    %28 = vector.extract_strided_slice %21 {offsets = [0, 0], sizes = [1, 16], strides = [1, 1]} : vector<16x16xf32> to vector<1x16xf32>
    %29 = vector.extract_strided_slice %19 {offsets = [0, 0], sizes = [16, 1], strides = [1, 1]} : vector<16x16xf32> to vector<16x1xf32>
    %30 = vector.broadcast %29 : vector<16x1xf32> to vector<16x16xf32>
    %31 = vector.broadcast %28 : vector<1x16xf32> to vector<16x16xf32>
    %32 = arith.addf %30, %31 : vector<16x16xf32>
    %cst_21 = arith.constant 0.000000e+00 : f32
    %33 = vector.broadcast %cst_21 : f32 to vector<16x16xf32>
    %34 = arith.maximumf %32, %33 : vector<16x16xf32>
    %35 = vector.broadcast %27 : f32 to vector<16x16xf32>
    %36 = arith.mulf %35, %34 : vector<16x16xf32>
    %37 = arith.addf %26, %36 : vector<16x16xf32>
    %c1_22 = arith.constant 1 : index
    %38 = memref.load %arg6[%c1_22] : memref<16xf32, #tpu.memory_space<smem>>
    %39 = vector.extract_strided_slice %21 {offsets = [1, 0], sizes = [1, 16], strides = [1, 1]} : vector<16x16xf32> to vector<1x16xf32>
    %40 = vector.extract_strided_slice %19 {offsets = [0, 1], sizes = [16, 1], strides = [1, 1]} : vector<16x16xf32> to vector<16x1xf32>
    %41 = vector.broadcast %40 : vector<16x1xf32> to vector<16x16xf32>
    %42 = vector.broadcast %39 : vector<1x16xf32> to vector<16x16xf32>
    %43 = arith.addf %41, %42 : vector<16x16xf32>
    %cst_23 = arith.constant 0.000000e+00 : f32
    %44 = vector.broadcast %cst_23 : f32 to vector<16x16xf32>
    %45 = arith.maximumf %43, %44 : vector<16x16xf32>
    %46 = vector.broadcast %38 : f32 to vector<16x16xf32>
    %47 = arith.mulf %46, %45 : vector<16x16xf32>
    %48 = arith.addf %37, %47 : vector<16x16xf32>
    %c2 = arith.constant 2 : index
    %49 = memref.load %arg6[%c2] : memref<16xf32, #tpu.memory_space<smem>>
    %50 = vector.extract_strided_slice %21 {offsets = [2, 0], sizes = [1, 16], strides = [1, 1]} : vector<16x16xf32> to vector<1x16xf32>
    %51 = vector.extract_strided_slice %19 {offsets = [0, 2], sizes = [16, 1], strides = [1, 1]} : vector<16x16xf32> to vector<16x1xf32>
    %52 = vector.broadcast %51 : vector<16x1xf32> to vector<16x16xf32>
    %53 = vector.broadcast %50 : vector<1x16xf32> to vector<16x16xf32>
    %54 = arith.addf %52, %53 : vector<16x16xf32>
    %cst_24 = arith.constant 0.000000e+00 : f32
    %55 = vector.broadcast %cst_24 : f32 to vector<16x16xf32>
    %56 = arith.maximumf %54, %55 : vector<16x16xf32>
    %57 = vector.broadcast %49 : f32 to vector<16x16xf32>
    %58 = arith.mulf %57, %56 : vector<16x16xf32>
    %59 = arith.addf %48, %58 : vector<16x16xf32>
    %c3 = arith.constant 3 : index
    %60 = memref.load %arg6[%c3] : memref<16xf32, #tpu.memory_space<smem>>
    %61 = vector.extract_strided_slice %21 {offsets = [3, 0], sizes = [1, 16], strides = [1, 1]} : vector<16x16xf32> to vector<1x16xf32>
    %62 = vector.extract_strided_slice %19 {offsets = [0, 3], sizes = [16, 1], strides = [1, 1]} : vector<16x16xf32> to vector<16x1xf32>
    %63 = vector.broadcast %62 : vector<16x1xf32> to vector<16x16xf32>
    %64 = vector.broadcast %61 : vector<1x16xf32> to vector<16x16xf32>
    %65 = arith.addf %63, %64 : vector<16x16xf32>
    %cst_25 = arith.constant 0.000000e+00 : f32
    %66 = vector.broadcast %cst_25 : f32 to vector<16x16xf32>
    %67 = arith.maximumf %65, %66 : vector<16x16xf32>
    %68 = vector.broadcast %60 : f32 to vector<16x16xf32>
    %69 = arith.mulf %68, %67 : vector<16x16xf32>
    %70 = arith.addf %59, %69 : vector<16x16xf32>
    %c4 = arith.constant 4 : index
    %71 = memref.load %arg6[%c4] : memref<16xf32, #tpu.memory_space<smem>>
    %72 = vector.extract_strided_slice %21 {offsets = [4, 0], sizes = [1, 16], strides = [1, 1]} : vector<16x16xf32> to vector<1x16xf32>
    %73 = vector.extract_strided_slice %19 {offsets = [0, 4], sizes = [16, 1], strides = [1, 1]} : vector<16x16xf32> to vector<16x1xf32>
    %74 = vector.broadcast %73 : vector<16x1xf32> to vector<16x16xf32>
    %75 = vector.broadcast %72 : vector<1x16xf32> to vector<16x16xf32>
    %76 = arith.addf %74, %75 : vector<16x16xf32>
    %cst_26 = arith.constant 0.000000e+00 : f32
    %77 = vector.broadcast %cst_26 : f32 to vector<16x16xf32>
    %78 = arith.maximumf %76, %77 : vector<16x16xf32>
    %79 = vector.broadcast %71 : f32 to vector<16x16xf32>
    %80 = arith.mulf %79, %78 : vector<16x16xf32>
    %81 = arith.addf %70, %80 : vector<16x16xf32>
    %c5 = arith.constant 5 : index
    %82 = memref.load %arg6[%c5] : memref<16xf32, #tpu.memory_space<smem>>
    %83 = vector.extract_strided_slice %21 {offsets = [5, 0], sizes = [1, 16], strides = [1, 1]} : vector<16x16xf32> to vector<1x16xf32>
    %84 = vector.extract_strided_slice %19 {offsets = [0, 5], sizes = [16, 1], strides = [1, 1]} : vector<16x16xf32> to vector<16x1xf32>
    %85 = vector.broadcast %84 : vector<16x1xf32> to vector<16x16xf32>
    %86 = vector.broadcast %83 : vector<1x16xf32> to vector<16x16xf32>
    %87 = arith.addf %85, %86 : vector<16x16xf32>
    %cst_27 = arith.constant 0.000000e+00 : f32
    %88 = vector.broadcast %cst_27 : f32 to vector<16x16xf32>
    %89 = arith.maximumf %87, %88 : vector<16x16xf32>
    %90 = vector.broadcast %82 : f32 to vector<16x16xf32>
    %91 = arith.mulf %90, %89 : vector<16x16xf32>
    %92 = arith.addf %81, %91 : vector<16x16xf32>
    %c6 = arith.constant 6 : index
    %93 = memref.load %arg6[%c6] : memref<16xf32, #tpu.memory_space<smem>>
    %94 = vector.extract_strided_slice %21 {offsets = [6, 0], sizes = [1, 16], strides = [1, 1]} : vector<16x16xf32> to vector<1x16xf32>
    %95 = vector.extract_strided_slice %19 {offsets = [0, 6], sizes = [16, 1], strides = [1, 1]} : vector<16x16xf32> to vector<16x1xf32>
    %96 = vector.broadcast %95 : vector<16x1xf32> to vector<16x16xf32>
    %97 = vector.broadcast %94 : vector<1x16xf32> to vector<16x16xf32>
    %98 = arith.addf %96, %97 : vector<16x16xf32>
    %cst_28 = arith.constant 0.000000e+00 : f32
    %99 = vector.broadcast %cst_28 : f32 to vector<16x16xf32>
    %100 = arith.maximumf %98, %99 : vector<16x16xf32>
    %101 = vector.broadcast %93 : f32 to vector<16x16xf32>
    %102 = arith.mulf %101, %100 : vector<16x16xf32>
    %103 = arith.addf %92, %102 : vector<16x16xf32>
    %c7 = arith.constant 7 : index
    %104 = memref.load %arg6[%c7] : memref<16xf32, #tpu.memory_space<smem>>
    %105 = vector.extract_strided_slice %21 {offsets = [7, 0], sizes = [1, 16], strides = [1, 1]} : vector<16x16xf32> to vector<1x16xf32>
    %106 = vector.extract_strided_slice %19 {offsets = [0, 7], sizes = [16, 1], strides = [1, 1]} : vector<16x16xf32> to vector<16x1xf32>
    %107 = vector.broadcast %106 : vector<16x1xf32> to vector<16x16xf32>
    %108 = vector.broadcast %105 : vector<1x16xf32> to vector<16x16xf32>
    %109 = arith.addf %107, %108 : vector<16x16xf32>
    %cst_29 = arith.constant 0.000000e+00 : f32
    %110 = vector.broadcast %cst_29 : f32 to vector<16x16xf32>
    %111 = arith.maximumf %109, %110 : vector<16x16xf32>
    %112 = vector.broadcast %104 : f32 to vector<16x16xf32>
    %113 = arith.mulf %112, %111 : vector<16x16xf32>
    %114 = arith.addf %103, %113 : vector<16x16xf32>
    %115 = vector.extract_strided_slice %25 {offsets = [0, 0], sizes = [16, 1], strides = [1, 1]} : vector<16x2xf32> to vector<16x1xf32>
    %116 = vector.extract_strided_slice %23 {offsets = [0, 0], sizes = [1, 16], strides = [1, 1]} : vector<2x16xf32> to vector<1x16xf32>
    %117 = vector.broadcast %115 : vector<16x1xf32> to vector<16x16xf32>
    %118 = vector.broadcast %116 : vector<1x16xf32> to vector<16x16xf32>
    %119 = arith.addf %117, %118 : vector<16x16xf32>
    %cst_30 = arith.constant 2.000000e-01 : f32
    %120 = vector.broadcast %cst_30 : f32 to vector<16x16xf32>
    %121 = arith.mulf %120, %119 : vector<16x16xf32>
    %cst_31 = arith.constant 8.000000e-01 : f32
    %122 = vector.broadcast %cst_31 : f32 to vector<16x16xf32>
    %123 = arith.mulf %122, %114 : vector<16x16xf32>
    %124 = arith.addf %121, %123 : vector<16x16xf32>
    %125 = arith.addf %124, %16 : vector<16x16xf32>
    %cst_32 = arith.constant dense<0xFF800000> : vector<16xf32>
    %126 = vector.multi_reduction <maximumf>, %125, %cst_32 [1] : vector<16x16xf32> to vector<16xf32>
    %127 = vector.shape_cast %126 : vector<16xf32> to vector<16x1xf32>
    %128 = vector.broadcast %127 : vector<16x1xf32> to vector<16x16xf32>
    %129 = arith.subf %125, %128 : vector<16x16xf32>
    %130 = math.exp %129 : vector<16x16xf32>
    %cst_33 = arith.constant dense<0.000000e+00> : vector<16xf32>
    %131 = vector.multi_reduction <add>, %130, %cst_33 [1] : vector<16x16xf32> to vector<16xf32>
    %132 = vector.shape_cast %131 : vector<16xf32> to vector<16x1xf32>
    %133 = tpu.reciprocal %132 {approx = true} : vector<16x1xf32> -> vector<16x1xf32>
    %134 = vector.broadcast %133 : vector<16x1xf32> to vector<16x16xf32>
    %135 = arith.mulf %130, %134 : vector<16x16xf32>
    %136 = vector.extract_strided_slice %21 {offsets = [0, 0], sizes = [8, 16], strides = [1, 1]} : vector<16x16xf32> to vector<8x16xf32>
    %cst_34 = arith.constant dense<0.000000e+00> : vector<16x8xf32>
    %137 = tpu.matmul %135, %136, %cst_34 {dimension_numbers = #tpu.dot_dimension_numbers<[1], [1], [0], [0], [0, 0, 1, 0], [], []>} : vector<16x16xf32>, vector<8x16xf32>, vector<16x8xf32> -> vector<16x8xf32>
    %c0_35 = arith.constant 0 : index
    %c0_36 = arith.constant 0 : index
    %138 = vector.load %arg4[%c0_35, %c0_36] : memref<1x16xf32, #tpu.memory_space<vmem>>, vector<1x8xf32>
    %139 = vector.broadcast %138 : vector<1x8xf32> to vector<16x8xf32>
    %140 = arith.addf %137, %139 : vector<16x8xf32>
    %cst_37 = arith.constant 0.000000e+00 : f32
    %141 = vector.broadcast %cst_37 : f32 to vector<16x8xf32>
    %142 = arith.maximumf %140, %141 : vector<16x8xf32>
    %c0_38 = arith.constant 0 : index
    %c0_39 = arith.constant 0 : index
    %143 = vector.load %arg16[%c0_38, %c0_39] : memref<16x16xf32, #tpu.memory_space<vmem>>, vector<16x8xf32>
    tpu.vector_store %arg16[%c0_38, %c0_39], %142 {strides = array<i32>} : memref<16x16xf32, #tpu.memory_space<vmem>>, vector<16x8xf32>,
    %cst_40 = arith.constant 0.000000e+00 : f32
    %144 = vector.broadcast %cst_40 : f32 to vector<16x16xf32>
    %c8 = arith.constant 8 : index
    %145 = memref.load %arg6[%c8] : memref<16xf32, #tpu.memory_space<smem>>
    %146 = vector.extract_strided_slice %21 {offsets = [8, 0], sizes = [1, 16], strides = [1, 1]} : vector<16x16xf32> to vector<1x16xf32>
    %147 = vector.extract_strided_slice %19 {offsets = [0, 8], sizes = [16, 1], strides = [1, 1]} : vector<16x16xf32> to vector<16x1xf32>
    %148 = vector.broadcast %147 : vector<16x1xf32> to vector<16x16xf32>
    %149 = vector.broadcast %146 : vector<1x16xf32> to vector<16x16xf32>
    %150 = arith.addf %148, %149 : vector<16x16xf32>
    %cst_41 = arith.constant 0.000000e+00 : f32
    %151 = vector.broadcast %cst_41 : f32 to vector<16x16xf32>
    %152 = arith.maximumf %150, %151 : vector<16x16xf32>
    %153 = vector.broadcast %145 : f32 to vector<16x16xf32>
    %154 = arith.mulf %153, %152 : vector<16x16xf32>
    %155 = arith.addf %144, %154 : vector<16x16xf32>
    %c9 = arith.constant 9 : index
    %156 = memref.load %arg6[%c9] : memref<16xf32, #tpu.memory_space<smem>>
    %157 = vector.extract_strided_slice %21 {offsets = [9, 0], sizes = [1, 16], strides = [1, 1]} : vector<16x16xf32> to vector<1x16xf32>
    %158 = vector.extract_strided_slice %19 {offsets = [0, 9], sizes = [16, 1], strides = [1, 1]} : vector<16x16xf32> to vector<16x1xf32>
    %159 = vector.broadcast %158 : vector<16x1xf32> to vector<16x16xf32>
    %160 = vector.broadcast %157 : vector<1x16xf32> to vector<16x16xf32>
    %161 = arith.addf %159, %160 : vector<16x16xf32>
    %cst_42 = arith.constant 0.000000e+00 : f32
    %162 = vector.broadcast %cst_42 : f32 to vector<16x16xf32>
    %163 = arith.maximumf %161, %162 : vector<16x16xf32>
    %164 = vector.broadcast %156 : f32 to vector<16x16xf32>
    %165 = arith.mulf %164, %163 : vector<16x16xf32>
    %166 = arith.addf %155, %165 : vector<16x16xf32>
    %c10 = arith.constant 10 : index
    %167 = memref.load %arg6[%c10] : memref<16xf32, #tpu.memory_space<smem>>
    %168 = vector.extract_strided_slice %21 {offsets = [10, 0], sizes = [1, 16], strides = [1, 1]} : vector<16x16xf32> to vector<1x16xf32>
    %169 = vector.extract_strided_slice %19 {offsets = [0, 10], sizes = [16, 1], strides = [1, 1]} : vector<16x16xf32> to vector<16x1xf32>
    %170 = vector.broadcast %169 : vector<16x1xf32> to vector<16x16xf32>
    %171 = vector.broadcast %168 : vector<1x16xf32> to vector<16x16xf32>
    %172 = arith.addf %170, %171 : vector<16x16xf32>
    %cst_43 = arith.constant 0.000000e+00 : f32
    %173 = vector.broadcast %cst_43 : f32 to vector<16x16xf32>
    %174 = arith.maximumf %172, %173 : vector<16x16xf32>
    %175 = vector.broadcast %167 : f32 to vector<16x16xf32>
    %176 = arith.mulf %175, %174 : vector<16x16xf32>
    %177 = arith.addf %166, %176 : vector<16x16xf32>
    %c11 = arith.constant 11 : index
    %178 = memref.load %arg6[%c11] : memref<16xf32, #tpu.memory_space<smem>>
    %179 = vector.extract_strided_slice %21 {offsets = [11, 0], sizes = [1, 16], strides = [1, 1]} : vector<16x16xf32> to vector<1x16xf32>
    %180 = vector.extract_strided_slice %19 {offsets = [0, 11], sizes = [16, 1], strides = [1, 1]} : vector<16x16xf32> to vector<16x1xf32>
    %181 = vector.broadcast %180 : vector<16x1xf32> to vector<16x16xf32>
    %182 = vector.broadcast %179 : vector<1x16xf32> to vector<16x16xf32>
    %183 = arith.addf %181, %182 : vector<16x16xf32>
    %cst_44 = arith.constant 0.000000e+00 : f32
    %184 = vector.broadcast %cst_44 : f32 to vector<16x16xf32>
    %185 = arith.maximumf %183, %184 : vector<16x16xf32>
    %186 = vector.broadcast %178 : f32 to vector<16x16xf32>
    %187 = arith.mulf %186, %185 : vector<16x16xf32>
    %188 = arith.addf %177, %187 : vector<16x16xf32>
    %c12 = arith.constant 12 : index
    %189 = memref.load %arg6[%c12] : memref<16xf32, #tpu.memory_space<smem>>
    %190 = vector.extract_strided_slice %21 {offsets = [12, 0], sizes = [1, 16], strides = [1, 1]} : vector<16x16xf32> to vector<1x16xf32>
    %191 = vector.extract_strided_slice %19 {offsets = [0, 12], sizes = [16, 1], strides = [1, 1]} : vector<16x16xf32> to vector<16x1xf32>
    %192 = vector.broadcast %191 : vector<16x1xf32> to vector<16x16xf32>
    %193 = vector.broadcast %190 : vector<1x16xf32> to vector<16x16xf32>
    %194 = arith.addf %192, %193 : vector<16x16xf32>
    %cst_45 = arith.constant 0.000000e+00 : f32
    %195 = vector.broadcast %cst_45 : f32 to vector<16x16xf32>
    %196 = arith.maximumf %194, %195 : vector<16x16xf32>
    %197 = vector.broadcast %189 : f32 to vector<16x16xf32>
    %198 = arith.mulf %197, %196 : vector<16x16xf32>
    %199 = arith.addf %188, %198 : vector<16x16xf32>
    %c13 = arith.constant 13 : index
    %200 = memref.load %arg6[%c13] : memref<16xf32, #tpu.memory_space<smem>>
    %201 = vector.extract_strided_slice %21 {offsets = [13, 0], sizes = [1, 16], strides = [1, 1]} : vector<16x16xf32> to vector<1x16xf32>
    %202 = vector.extract_strided_slice %19 {offsets = [0, 13], sizes = [16, 1], strides = [1, 1]} : vector<16x16xf32> to vector<16x1xf32>
    %203 = vector.broadcast %202 : vector<16x1xf32> to vector<16x16xf32>
    %204 = vector.broadcast %201 : vector<1x16xf32> to vector<16x16xf32>
    %205 = arith.addf %203, %204 : vector<16x16xf32>
    %cst_46 = arith.constant 0.000000e+00 : f32
    %206 = vector.broadcast %cst_46 : f32 to vector<16x16xf32>
    %207 = arith.maximumf %205, %206 : vector<16x16xf32>
    %208 = vector.broadcast %200 : f32 to vector<16x16xf32>
    %209 = arith.mulf %208, %207 : vector<16x16xf32>
    %210 = arith.addf %199, %209 : vector<16x16xf32>
    %c14 = arith.constant 14 : index
    %211 = memref.load %arg6[%c14] : memref<16xf32, #tpu.memory_space<smem>>
    %212 = vector.extract_strided_slice %21 {offsets = [14, 0], sizes = [1, 16], strides = [1, 1]} : vector<16x16xf32> to vector<1x16xf32>
    %213 = vector.extract_strided_slice %19 {offsets = [0, 14], sizes = [16, 1], strides = [1, 1]} : vector<16x16xf32> to vector<16x1xf32>
    %214 = vector.broadcast %213 : vector<16x1xf32> to vector<16x16xf32>
    %215 = vector.broadcast %212 : vector<1x16xf32> to vector<16x16xf32>
    %216 = arith.addf %214, %215 : vector<16x16xf32>
    %cst_47 = arith.constant 0.000000e+00 : f32
    %217 = vector.broadcast %cst_47 : f32 to vector<16x16xf32>
    %218 = arith.maximumf %216, %217 : vector<16x16xf32>
    %219 = vector.broadcast %211 : f32 to vector<16x16xf32>
    %220 = arith.mulf %219, %218 : vector<16x16xf32>
    %221 = arith.addf %210, %220 : vector<16x16xf32>
    %c15 = arith.constant 15 : index
    %222 = memref.load %arg6[%c15] : memref<16xf32, #tpu.memory_space<smem>>
    %223 = vector.extract_strided_slice %21 {offsets = [15, 0], sizes = [1, 16], strides = [1, 1]} : vector<16x16xf32> to vector<1x16xf32>
    %224 = vector.extract_strided_slice %19 {offsets = [0, 15], sizes = [16, 1], strides = [1, 1]} : vector<16x16xf32> to vector<16x1xf32>
    %225 = vector.broadcast %224 : vector<16x1xf32> to vector<16x16xf32>
    %226 = vector.broadcast %223 : vector<1x16xf32> to vector<16x16xf32>
    %227 = arith.addf %225, %226 : vector<16x16xf32>
    %cst_48 = arith.constant 0.000000e+00 : f32
    %228 = vector.broadcast %cst_48 : f32 to vector<16x16xf32>
    %229 = arith.maximumf %227, %228 : vector<16x16xf32>
    %230 = vector.broadcast %222 : f32 to vector<16x16xf32>
    %231 = arith.mulf %230, %229 : vector<16x16xf32>
    %232 = arith.addf %221, %231 : vector<16x16xf32>
    %233 = vector.extract_strided_slice %25 {offsets = [0, 1], sizes = [16, 1], strides = [1, 1]} : vector<16x2xf32> to vector<16x1xf32>
    %234 = vector.extract_strided_slice %23 {offsets = [1, 0], sizes = [1, 16], strides = [1, 1]} : vector<2x16xf32> to vector<1x16xf32>
    %235 = vector.broadcast %233 : vector<16x1xf32> to vector<16x16xf32>
    %236 = vector.broadcast %234 : vector<1x16xf32> to vector<16x16xf32>
    %237 = arith.addf %235, %236 : vector<16x16xf32>
    %cst_49 = arith.constant 2.000000e-01 : f32
    %238 = vector.broadcast %cst_49 : f32 to vector<16x16xf32>
    %239 = arith.mulf %238, %237 : vector<16x16xf32>
    %cst_50 = arith.constant 8.000000e-01 : f32
    %240 = vector.broadcast %cst_50 : f32 to vector<16x16xf32>
    %241 = arith.mulf %240, %232 : vector<16x16xf32>
    %242 = arith.addf %239, %241 : vector<16x16xf32>
    %243 = arith.addf %242, %16 : vector<16x16xf32>
    %cst_51 = arith.constant dense<0xFF800000> : vector<16xf32>
    %244 = vector.multi_reduction <maximumf>, %243, %cst_51 [1] : vector<16x16xf32> to vector<16xf32>
    %245 = vector.shape_cast %244 : vector<16xf32> to vector<16x1xf32>
    %246 = vector.broadcast %245 : vector<16x1xf32> to vector<16x16xf32>
    %247 = arith.subf %243, %246 : vector<16x16xf32>
    %248 = math.exp %247 : vector<16x16xf32>
    %cst_52 = arith.constant dense<0.000000e+00> : vector<16xf32>
    %249 = vector.multi_reduction <add>, %248, %cst_52 [1] : vector<16x16xf32> to vector<16xf32>
    %250 = vector.shape_cast %249 : vector<16xf32> to vector<16x1xf32>
    %251 = tpu.reciprocal %250 {approx = true} : vector<16x1xf32> -> vector<16x1xf32>
    %252 = vector.broadcast %251 : vector<16x1xf32> to vector<16x16xf32>
    %253 = arith.mulf %248, %252 : vector<16x16xf32>
    %254 = vector.extract_strided_slice %21 {offsets = [8, 0], sizes = [8, 16], strides = [1, 1]} : vector<16x16xf32> to vector<8x16xf32>
    %cst_53 = arith.constant dense<0.000000e+00> : vector<16x8xf32>
    %255 = tpu.matmul %253, %254, %cst_53 {dimension_numbers = #tpu.dot_dimension_numbers<[1], [1], [0], [0], [0, 0, 1, 0], [], []>} : vector<16x16xf32>, vector<8x16xf32>, vector<16x8xf32> -> vector<16x8xf32>
    %c0_54 = arith.constant 0 : index
    %c8_55 = arith.constant 8 : index
    %256 = vector.load %arg4[%c0_54, %c8_55] : memref<1x16xf32, #tpu.memory_space<vmem>>, vector<1x8xf32>
    %257 = vector.broadcast %256 : vector<1x8xf32> to vector<16x8xf32>
    %258 = arith.addf %255, %257 : vector<16x8xf32>
    %cst_56 = arith.constant 0.000000e+00 : f32
    %259 = vector.broadcast %cst_56 : f32 to vector<16x8xf32>
    %260 = arith.maximumf %258, %259 : vector<16x8xf32>
    %c0_57 = arith.constant 0 : index
    %c8_58 = arith.constant 8 : index
    %261 = vector.load %arg16[%c0_57, %c8_58] : memref<16x16xf32, #tpu.memory_space<vmem>>, vector<16x8xf32>
    tpu.vector_store %arg16[%c0_57, %c8_58], %260 {strides = array<i32>} : memref<16x16xf32, #tpu.memory_space<vmem>>, vector<16x8xf32>,
    %c0_59 = arith.constant 0 : index
    %c0_60 = arith.constant 0 : index
    %262 = vector.load %arg16[%c0_59, %c0_60] : memref<16x16xf32, #tpu.memory_space<vmem>>, vector<16x16xf32>
    %c0_61 = arith.constant 0 : index
    %c0_62 = arith.constant 0 : index
    %263 = vector.load %arg8[%c0_61, %c0_62] : memref<16x16xf32, #tpu.memory_space<vmem>>, vector<16x16xf32>
    %cst_63 = arith.constant dense<0.000000e+00> : vector<16x16xf32>
    %264 = tpu.matmul %262, %263, %cst_63 {dimension_numbers = #tpu.dot_dimension_numbers<[1], [0], [0], [1], [0, 0, 1, 1], [], []>} : vector<16x16xf32>, vector<16x16xf32>, vector<16x16xf32> -> vector<16x16xf32>
    %c0_64 = arith.constant 0 : index
    %c0_65 = arith.constant 0 : index
    %265 = vector.load %arg7[%c0_64, %c0_65] : memref<16x16xf32, #tpu.memory_space<vmem>>, vector<16x16xf32>
    %cst_66 = arith.constant dense<0.000000e+00> : vector<16x16xf32>
    %266 = tpu.matmul %265, %262, %cst_66 {dimension_numbers = #tpu.dot_dimension_numbers<[1], [1], [0], [0], [0, 0, 1, 0], [], []>} : vector<16x16xf32>, vector<16x16xf32>, vector<16x16xf32> -> vector<16x16xf32>
    %c0_67 = arith.constant 0 : index
    %c0_68 = arith.constant 0 : index
    %267 = vector.load %arg10[%c0_67, %c0_68] : memref<2x16xf32, #tpu.memory_space<vmem>>, vector<2x16xf32>
    %cst_69 = arith.constant dense<0.000000e+00> : vector<2x16xf32>
    %268 = tpu.matmul %267, %266, %cst_69 {dimension_numbers = #tpu.dot_dimension_numbers<[1], [0], [0], [1], [0, 0, 1, 1], [], []>} : vector<2x16xf32>, vector<16x16xf32>, vector<2x16xf32> -> vector<2x16xf32>
    %c0_70 = arith.constant 0 : index
    %c0_71 = arith.constant 0 : index
    %269 = vector.load %arg10[%c0_70, %c0_71] : memref<2x16xf32, #tpu.memory_space<vmem>>, vector<2x16xf32>
    %cst_72 = arith.constant dense<0.000000e+00> : vector<16x2xf32>
    %270 = tpu.matmul %264, %269, %cst_72 {dimension_numbers = #tpu.dot_dimension_numbers<[1], [1], [0], [0], [0, 0, 1, 0], [], []>} : vector<16x16xf32>, vector<2x16xf32>, vector<16x2xf32> -> vector<16x2xf32>
    %cst_73 = arith.constant 0.000000e+00 : f32
    %271 = vector.broadcast %cst_73 : f32 to vector<16x16xf32>
    %c0_74 = arith.constant 0 : index
    %272 = memref.load %arg11[%c0_74] : memref<16xf32, #tpu.memory_space<smem>>
    %273 = vector.extract_strided_slice %266 {offsets = [0, 0], sizes = [1, 16], strides = [1, 1]} : vector<16x16xf32> to vector<1x16xf32>
    %274 = vector.extract_strided_slice %264 {offsets = [0, 0], sizes = [16, 1], strides = [1, 1]} : vector<16x16xf32> to vector<16x1xf32>
    %275 = vector.broadcast %274 : vector<16x1xf32> to vector<16x16xf32>
    %276 = vector.broadcast %273 : vector<1x16xf32> to vector<16x16xf32>
    %277 = arith.addf %275, %276 : vector<16x16xf32>
    %cst_75 = arith.constant 0.000000e+00 : f32
    %278 = vector.broadcast %cst_75 : f32 to vector<16x16xf32>
    %279 = arith.maximumf %277, %278 : vector<16x16xf32>
    %280 = vector.broadcast %272 : f32 to vector<16x16xf32>
    %281 = arith.mulf %280, %279 : vector<16x16xf32>
    %282 = arith.addf %271, %281 : vector<16x16xf32>
    %c1_76 = arith.constant 1 : index
    %283 = memref.load %arg11[%c1_76] : memref<16xf32, #tpu.memory_space<smem>>
    %284 = vector.extract_strided_slice %266 {offsets = [1, 0], sizes = [1, 16], strides = [1, 1]} : vector<16x16xf32> to vector<1x16xf32>
    %285 = vector.extract_strided_slice %264 {offsets = [0, 1], sizes = [16, 1], strides = [1, 1]} : vector<16x16xf32> to vector<16x1xf32>
    %286 = vector.broadcast %285 : vector<16x1xf32> to vector<16x16xf32>
    %287 = vector.broadcast %284 : vector<1x16xf32> to vector<16x16xf32>
    %288 = arith.addf %286, %287 : vector<16x16xf32>
    %cst_77 = arith.constant 0.000000e+00 : f32
    %289 = vector.broadcast %cst_77 : f32 to vector<16x16xf32>
    %290 = arith.maximumf %288, %289 : vector<16x16xf32>
    %291 = vector.broadcast %283 : f32 to vector<16x16xf32>
    %292 = arith.mulf %291, %290 : vector<16x16xf32>
    %293 = arith.addf %282, %292 : vector<16x16xf32>
    %c2_78 = arith.constant 2 : index
    %294 = memref.load %arg11[%c2_78] : memref<16xf32, #tpu.memory_space<smem>>
    %295 = vector.extract_strided_slice %266 {offsets = [2, 0], sizes = [1, 16], strides = [1, 1]} : vector<16x16xf32> to vector<1x16xf32>
    %296 = vector.extract_strided_slice %264 {offsets = [0, 2], sizes = [16, 1], strides = [1, 1]} : vector<16x16xf32> to vector<16x1xf32>
    %297 = vector.broadcast %296 : vector<16x1xf32> to vector<16x16xf32>
    %298 = vector.broadcast %295 : vector<1x16xf32> to vector<16x16xf32>
    %299 = arith.addf %297, %298 : vector<16x16xf32>
    %cst_79 = arith.constant 0.000000e+00 : f32
    %300 = vector.broadcast %cst_79 : f32 to vector<16x16xf32>
    %301 = arith.maximumf %299, %300 : vector<16x16xf32>
    %302 = vector.broadcast %294 : f32 to vector<16x16xf32>
    %303 = arith.mulf %302, %301 : vector<16x16xf32>
    %304 = arith.addf %293, %303 : vector<16x16xf32>
    %c3_80 = arith.constant 3 : index
    %305 = memref.load %arg11[%c3_80] : memref<16xf32, #tpu.memory_space<smem>>
    %306 = vector.extract_strided_slice %266 {offsets = [3, 0], sizes = [1, 16], strides = [1, 1]} : vector<16x16xf32> to vector<1x16xf32>
    %307 = vector.extract_strided_slice %264 {offsets = [0, 3], sizes = [16, 1], strides = [1, 1]} : vector<16x16xf32> to vector<16x1xf32>
    %308 = vector.broadcast %307 : vector<16x1xf32> to vector<16x16xf32>
    %309 = vector.broadcast %306 : vector<1x16xf32> to vector<16x16xf32>
    %310 = arith.addf %308, %309 : vector<16x16xf32>
    %cst_81 = arith.constant 0.000000e+00 : f32
    %311 = vector.broadcast %cst_81 : f32 to vector<16x16xf32>
    %312 = arith.maximumf %310, %311 : vector<16x16xf32>
    %313 = vector.broadcast %305 : f32 to vector<16x16xf32>
    %314 = arith.mulf %313, %312 : vector<16x16xf32>
    %315 = arith.addf %304, %314 : vector<16x16xf32>
    %c4_82 = arith.constant 4 : index
    %316 = memref.load %arg11[%c4_82] : memref<16xf32, #tpu.memory_space<smem>>
    %317 = vector.extract_strided_slice %266 {offsets = [4, 0], sizes = [1, 16], strides = [1, 1]} : vector<16x16xf32> to vector<1x16xf32>
    %318 = vector.extract_strided_slice %264 {offsets = [0, 4], sizes = [16, 1], strides = [1, 1]} : vector<16x16xf32> to vector<16x1xf32>
    %319 = vector.broadcast %318 : vector<16x1xf32> to vector<16x16xf32>
    %320 = vector.broadcast %317 : vector<1x16xf32> to vector<16x16xf32>
    %321 = arith.addf %319, %320 : vector<16x16xf32>
    %cst_83 = arith.constant 0.000000e+00 : f32
    %322 = vector.broadcast %cst_83 : f32 to vector<16x16xf32>
    %323 = arith.maximumf %321, %322 : vector<16x16xf32>
    %324 = vector.broadcast %316 : f32 to vector<16x16xf32>
    %325 = arith.mulf %324, %323 : vector<16x16xf32>
    %326 = arith.addf %315, %325 : vector<16x16xf32>
    %c5_84 = arith.constant 5 : index
    %327 = memref.load %arg11[%c5_84] : memref<16xf32, #tpu.memory_space<smem>>
    %328 = vector.extract_strided_slice %266 {offsets = [5, 0], sizes = [1, 16], strides = [1, 1]} : vector<16x16xf32> to vector<1x16xf32>
    %329 = vector.extract_strided_slice %264 {offsets = [0, 5], sizes = [16, 1], strides = [1, 1]} : vector<16x16xf32> to vector<16x1xf32>
    %330 = vector.broadcast %329 : vector<16x1xf32> to vector<16x16xf32>
    %331 = vector.broadcast %328 : vector<1x16xf32> to vector<16x16xf32>
    %332 = arith.addf %330, %331 : vector<16x16xf32>
    %cst_85 = arith.constant 0.000000e+00 : f32
    %333 = vector.broadcast %cst_85 : f32 to vector<16x16xf32>
    %334 = arith.maximumf %332, %333 : vector<16x16xf32>
    %335 = vector.broadcast %327 : f32 to vector<16x16xf32>
    %336 = arith.mulf %335, %334 : vector<16x16xf32>
    %337 = arith.addf %326, %336 : vector<16x16xf32>
    %c6_86 = arith.constant 6 : index
    %338 = memref.load %arg11[%c6_86] : memref<16xf32, #tpu.memory_space<smem>>
    %339 = vector.extract_strided_slice %266 {offsets = [6, 0], sizes = [1, 16], strides = [1, 1]} : vector<16x16xf32> to vector<1x16xf32>
    %340 = vector.extract_strided_slice %264 {offsets = [0, 6], sizes = [16, 1], strides = [1, 1]} : vector<16x16xf32> to vector<16x1xf32>
    %341 = vector.broadcast %340 : vector<16x1xf32> to vector<16x16xf32>
    %342 = vector.broadcast %339 : vector<1x16xf32> to vector<16x16xf32>
    %343 = arith.addf %341, %342 : vector<16x16xf32>
    %cst_87 = arith.constant 0.000000e+00 : f32
    %344 = vector.broadcast %cst_87 : f32 to vector<16x16xf32>
    %345 = arith.maximumf %343, %344 : vector<16x16xf32>
    %346 = vector.broadcast %338 : f32 to vector<16x16xf32>
    %347 = arith.mulf %346, %345 : vector<16x16xf32>
    %348 = arith.addf %337, %347 : vector<16x16xf32>
    %c7_88 = arith.constant 7 : index
    %349 = memref.load %arg11[%c7_88] : memref<16xf32, #tpu.memory_space<smem>>
    %350 = vector.extract_strided_slice %266 {offsets = [7, 0], sizes = [1, 16], strides = [1, 1]} : vector<16x16xf32> to vector<1x16xf32>
    %351 = vector.extract_strided_slice %264 {offsets = [0, 7], sizes = [16, 1], strides = [1, 1]} : vector<16x16xf32> to vector<16x1xf32>
    %352 = vector.broadcast %351 : vector<16x1xf32> to vector<16x16xf32>
    %353 = vector.broadcast %350 : vector<1x16xf32> to vector<16x16xf32>
    %354 = arith.addf %352, %353 : vector<16x16xf32>
    %cst_89 = arith.constant 0.000000e+00 : f32
    %355 = vector.broadcast %cst_89 : f32 to vector<16x16xf32>
    %356 = arith.maximumf %354, %355 : vector<16x16xf32>
    %357 = vector.broadcast %349 : f32 to vector<16x16xf32>
    %358 = arith.mulf %357, %356 : vector<16x16xf32>
    %359 = arith.addf %348, %358 : vector<16x16xf32>
    %360 = vector.extract_strided_slice %270 {offsets = [0, 0], sizes = [16, 1], strides = [1, 1]} : vector<16x2xf32> to vector<16x1xf32>
    %361 = vector.extract_strided_slice %268 {offsets = [0, 0], sizes = [1, 16], strides = [1, 1]} : vector<2x16xf32> to vector<1x16xf32>
    %362 = vector.broadcast %360 : vector<16x1xf32> to vector<16x16xf32>
    %363 = vector.broadcast %361 : vector<1x16xf32> to vector<16x16xf32>
    %364 = arith.addf %362, %363 : vector<16x16xf32>
    %cst_90 = arith.constant 2.000000e-01 : f32
    %365 = vector.broadcast %cst_90 : f32 to vector<16x16xf32>
    %366 = arith.mulf %365, %364 : vector<16x16xf32>
    %cst_91 = arith.constant 8.000000e-01 : f32
    %367 = vector.broadcast %cst_91 : f32 to vector<16x16xf32>
    %368 = arith.mulf %367, %359 : vector<16x16xf32>
    %369 = arith.addf %366, %368 : vector<16x16xf32>
    %370 = arith.addf %369, %16 : vector<16x16xf32>
    %cst_92 = arith.constant dense<0xFF800000> : vector<16xf32>
    %371 = vector.multi_reduction <maximumf>, %370, %cst_92 [1] : vector<16x16xf32> to vector<16xf32>
    %372 = vector.shape_cast %371 : vector<16xf32> to vector<16x1xf32>
    %373 = vector.broadcast %372 : vector<16x1xf32> to vector<16x16xf32>
    %374 = arith.subf %370, %373 : vector<16x16xf32>
    %375 = math.exp %374 : vector<16x16xf32>
    %cst_93 = arith.constant dense<0.000000e+00> : vector<16xf32>
    %376 = vector.multi_reduction <add>, %375, %cst_93 [1] : vector<16x16xf32> to vector<16xf32>
    %377 = vector.shape_cast %376 : vector<16xf32> to vector<16x1xf32>
    %378 = tpu.reciprocal %377 {approx = true} : vector<16x1xf32> -> vector<16x1xf32>
    %379 = vector.broadcast %378 : vector<16x1xf32> to vector<16x16xf32>
    %380 = arith.mulf %375, %379 : vector<16x16xf32>
    %381 = vector.extract_strided_slice %266 {offsets = [0, 0], sizes = [8, 16], strides = [1, 1]} : vector<16x16xf32> to vector<8x16xf32>
    %cst_94 = arith.constant dense<0.000000e+00> : vector<16x8xf32>
    %382 = tpu.matmul %380, %381, %cst_94 {dimension_numbers = #tpu.dot_dimension_numbers<[1], [1], [0], [0], [0, 0, 1, 0], [], []>} : vector<16x16xf32>, vector<8x16xf32>, vector<16x8xf32> -> vector<16x8xf32>
    %c0_95 = arith.constant 0 : index
    %c0_96 = arith.constant 0 : index
    %383 = vector.load %arg9[%c0_95, %c0_96] : memref<1x16xf32, #tpu.memory_space<vmem>>, vector<1x8xf32>
    %384 = vector.broadcast %383 : vector<1x8xf32> to vector<16x8xf32>
    %385 = arith.addf %382, %384 : vector<16x8xf32>
    %cst_97 = arith.constant 0.000000e+00 : f32
    %386 = vector.broadcast %cst_97 : f32 to vector<16x8xf32>
    %387 = arith.maximumf %385, %386 : vector<16x8xf32>
    %c0_98 = arith.constant 0 : index
    %c0_99 = arith.constant 0 : index
    %388 = vector.load %arg17[%c0_98, %c0_99] : memref<16x16xf32, #tpu.memory_space<vmem>>, vector<16x8xf32>
    tpu.vector_store %arg17[%c0_98, %c0_99], %387 {strides = array<i32>} : memref<16x16xf32, #tpu.memory_space<vmem>>, vector<16x8xf32>,
    %cst_100 = arith.constant 0.000000e+00 : f32
    %389 = vector.broadcast %cst_100 : f32 to vector<16x16xf32>
    %c8_101 = arith.constant 8 : index
    %390 = memref.load %arg11[%c8_101] : memref<16xf32, #tpu.memory_space<smem>>
    %391 = vector.extract_strided_slice %266 {offsets = [8, 0], sizes = [1, 16], strides = [1, 1]} : vector<16x16xf32> to vector<1x16xf32>
    %392 = vector.extract_strided_slice %264 {offsets = [0, 8], sizes = [16, 1], strides = [1, 1]} : vector<16x16xf32> to vector<16x1xf32>
    %393 = vector.broadcast %392 : vector<16x1xf32> to vector<16x16xf32>
    %394 = vector.broadcast %391 : vector<1x16xf32> to vector<16x16xf32>
    %395 = arith.addf %393, %394 : vector<16x16xf32>
    %cst_102 = arith.constant 0.000000e+00 : f32
    %396 = vector.broadcast %cst_102 : f32 to vector<16x16xf32>
    %397 = arith.maximumf %395, %396 : vector<16x16xf32>
    %398 = vector.broadcast %390 : f32 to vector<16x16xf32>
    %399 = arith.mulf %398, %397 : vector<16x16xf32>
    %400 = arith.addf %389, %399 : vector<16x16xf32>
    %c9_103 = arith.constant 9 : index
    %401 = memref.load %arg11[%c9_103] : memref<16xf32, #tpu.memory_space<smem>>
    %402 = vector.extract_strided_slice %266 {offsets = [9, 0], sizes = [1, 16], strides = [1, 1]} : vector<16x16xf32> to vector<1x16xf32>
    %403 = vector.extract_strided_slice %264 {offsets = [0, 9], sizes = [16, 1], strides = [1, 1]} : vector<16x16xf32> to vector<16x1xf32>
    %404 = vector.broadcast %403 : vector<16x1xf32> to vector<16x16xf32>
    %405 = vector.broadcast %402 : vector<1x16xf32> to vector<16x16xf32>
    %406 = arith.addf %404, %405 : vector<16x16xf32>
    %cst_104 = arith.constant 0.000000e+00 : f32
    %407 = vector.broadcast %cst_104 : f32 to vector<16x16xf32>
    %408 = arith.maximumf %406, %407 : vector<16x16xf32>
    %409 = vector.broadcast %401 : f32 to vector<16x16xf32>
    %410 = arith.mulf %409, %408 : vector<16x16xf32>
    %411 = arith.addf %400, %410 : vector<16x16xf32>
    %c10_105 = arith.constant 10 : index
    %412 = memref.load %arg11[%c10_105] : memref<16xf32, #tpu.memory_space<smem>>
    %413 = vector.extract_strided_slice %266 {offsets = [10, 0], sizes = [1, 16], strides = [1, 1]} : vector<16x16xf32> to vector<1x16xf32>
    %414 = vector.extract_strided_slice %264 {offsets = [0, 10], sizes = [16, 1], strides = [1, 1]} : vector<16x16xf32> to vector<16x1xf32>
    %415 = vector.broadcast %414 : vector<16x1xf32> to vector<16x16xf32>
    %416 = vector.broadcast %413 : vector<1x16xf32> to vector<16x16xf32>
    %417 = arith.addf %415, %416 : vector<16x16xf32>
    %cst_106 = arith.constant 0.000000e+00 : f32
    %418 = vector.broadcast %cst_106 : f32 to vector<16x16xf32>
    %419 = arith.maximumf %417, %418 : vector<16x16xf32>
    %420 = vector.broadcast %412 : f32 to vector<16x16xf32>
    %421 = arith.mulf %420, %419 : vector<16x16xf32>
    %422 = arith.addf %411, %421 : vector<16x16xf32>
    %c11_107 = arith.constant 11 : index
    %423 = memref.load %arg11[%c11_107] : memref<16xf32, #tpu.memory_space<smem>>
    %424 = vector.extract_strided_slice %266 {offsets = [11, 0], sizes = [1, 16], strides = [1, 1]} : vector<16x16xf32> to vector<1x16xf32>
    %425 = vector.extract_strided_slice %264 {offsets = [0, 11], sizes = [16, 1], strides = [1, 1]} : vector<16x16xf32> to vector<16x1xf32>
    %426 = vector.broadcast %425 : vector<16x1xf32> to vector<16x16xf32>
    %427 = vector.broadcast %424 : vector<1x16xf32> to vector<16x16xf32>
    %428 = arith.addf %426, %427 : vector<16x16xf32>
    %cst_108 = arith.constant 0.000000e+00 : f32
    %429 = vector.broadcast %cst_108 : f32 to vector<16x16xf32>
    %430 = arith.maximumf %428, %429 : vector<16x16xf32>
    %431 = vector.broadcast %423 : f32 to vector<16x16xf32>
    %432 = arith.mulf %431, %430 : vector<16x16xf32>
    %433 = arith.addf %422, %432 : vector<16x16xf32>
    %c12_109 = arith.constant 12 : index
    %434 = memref.load %arg11[%c12_109] : memref<16xf32, #tpu.memory_space<smem>>
    %435 = vector.extract_strided_slice %266 {offsets = [12, 0], sizes = [1, 16], strides = [1, 1]} : vector<16x16xf32> to vector<1x16xf32>
    %436 = vector.extract_strided_slice %264 {offsets = [0, 12], sizes = [16, 1], strides = [1, 1]} : vector<16x16xf32> to vector<16x1xf32>
    %437 = vector.broadcast %436 : vector<16x1xf32> to vector<16x16xf32>
    %438 = vector.broadcast %435 : vector<1x16xf32> to vector<16x16xf32>
    %439 = arith.addf %437, %438 : vector<16x16xf32>
    %cst_110 = arith.constant 0.000000e+00 : f32
    %440 = vector.broadcast %cst_110 : f32 to vector<16x16xf32>
    %441 = arith.maximumf %439, %440 : vector<16x16xf32>
    %442 = vector.broadcast %434 : f32 to vector<16x16xf32>
    %443 = arith.mulf %442, %441 : vector<16x16xf32>
    %444 = arith.addf %433, %443 : vector<16x16xf32>
    %c13_111 = arith.constant 13 : index
    %445 = memref.load %arg11[%c13_111] : memref<16xf32, #tpu.memory_space<smem>>
    %446 = vector.extract_strided_slice %266 {offsets = [13, 0], sizes = [1, 16], strides = [1, 1]} : vector<16x16xf32> to vector<1x16xf32>
    %447 = vector.extract_strided_slice %264 {offsets = [0, 13], sizes = [16, 1], strides = [1, 1]} : vector<16x16xf32> to vector<16x1xf32>
    %448 = vector.broadcast %447 : vector<16x1xf32> to vector<16x16xf32>
    %449 = vector.broadcast %446 : vector<1x16xf32> to vector<16x16xf32>
    %450 = arith.addf %448, %449 : vector<16x16xf32>
    %cst_112 = arith.constant 0.000000e+00 : f32
    %451 = vector.broadcast %cst_112 : f32 to vector<16x16xf32>
    %452 = arith.maximumf %450, %451 : vector<16x16xf32>
    %453 = vector.broadcast %445 : f32 to vector<16x16xf32>
    %454 = arith.mulf %453, %452 : vector<16x16xf32>
    %455 = arith.addf %444, %454 : vector<16x16xf32>
    %c14_113 = arith.constant 14 : index
    %456 = memref.load %arg11[%c14_113] : memref<16xf32, #tpu.memory_space<smem>>
    %457 = vector.extract_strided_slice %266 {offsets = [14, 0], sizes = [1, 16], strides = [1, 1]} : vector<16x16xf32> to vector<1x16xf32>
    %458 = vector.extract_strided_slice %264 {offsets = [0, 14], sizes = [16, 1], strides = [1, 1]} : vector<16x16xf32> to vector<16x1xf32>
    %459 = vector.broadcast %458 : vector<16x1xf32> to vector<16x16xf32>
    %460 = vector.broadcast %457 : vector<1x16xf32> to vector<16x16xf32>
    %461 = arith.addf %459, %460 : vector<16x16xf32>
    %cst_114 = arith.constant 0.000000e+00 : f32
    %462 = vector.broadcast %cst_114 : f32 to vector<16x16xf32>
    %463 = arith.maximumf %461, %462 : vector<16x16xf32>
    %464 = vector.broadcast %456 : f32 to vector<16x16xf32>
    %465 = arith.mulf %464, %463 : vector<16x16xf32>
    %466 = arith.addf %455, %465 : vector<16x16xf32>
    %c15_115 = arith.constant 15 : index
    %467 = memref.load %arg11[%c15_115] : memref<16xf32, #tpu.memory_space<smem>>
    %468 = vector.extract_strided_slice %266 {offsets = [15, 0], sizes = [1, 16], strides = [1, 1]} : vector<16x16xf32> to vector<1x16xf32>
    %469 = vector.extract_strided_slice %264 {offsets = [0, 15], sizes = [16, 1], strides = [1, 1]} : vector<16x16xf32> to vector<16x1xf32>
    %470 = vector.broadcast %469 : vector<16x1xf32> to vector<16x16xf32>
    %471 = vector.broadcast %468 : vector<1x16xf32> to vector<16x16xf32>
    %472 = arith.addf %470, %471 : vector<16x16xf32>
    %cst_116 = arith.constant 0.000000e+00 : f32
    %473 = vector.broadcast %cst_116 : f32 to vector<16x16xf32>
    %474 = arith.maximumf %472, %473 : vector<16x16xf32>
    %475 = vector.broadcast %467 : f32 to vector<16x16xf32>
    %476 = arith.mulf %475, %474 : vector<16x16xf32>
    %477 = arith.addf %466, %476 : vector<16x16xf32>
    %478 = vector.extract_strided_slice %270 {offsets = [0, 1], sizes = [16, 1], strides = [1, 1]} : vector<16x2xf32> to vector<16x1xf32>
    %479 = vector.extract_strided_slice %268 {offsets = [1, 0], sizes = [1, 16], strides = [1, 1]} : vector<2x16xf32> to vector<1x16xf32>
    %480 = vector.broadcast %478 : vector<16x1xf32> to vector<16x16xf32>
    %481 = vector.broadcast %479 : vector<1x16xf32> to vector<16x16xf32>
    %482 = arith.addf %480, %481 : vector<16x16xf32>
    %cst_117 = arith.constant 2.000000e-01 : f32
    %483 = vector.broadcast %cst_117 : f32 to vector<16x16xf32>
    %484 = arith.mulf %483, %482 : vector<16x16xf32>
    %cst_118 = arith.constant 8.000000e-01 : f32
    %485 = vector.broadcast %cst_118 : f32 to vector<16x16xf32>
    %486 = arith.mulf %485, %477 : vector<16x16xf32>
    %487 = arith.addf %484, %486 : vector<16x16xf32>
    %488 = arith.addf %487, %16 : vector<16x16xf32>
    %cst_119 = arith.constant dense<0xFF800000> : vector<16xf32>
    %489 = vector.multi_reduction <maximumf>, %488, %cst_119 [1] : vector<16x16xf32> to vector<16xf32>
    %490 = vector.shape_cast %489 : vector<16xf32> to vector<16x1xf32>
    %491 = vector.broadcast %490 : vector<16x1xf32> to vector<16x16xf32>
    %492 = arith.subf %488, %491 : vector<16x16xf32>
    %493 = math.exp %492 : vector<16x16xf32>
    %cst_120 = arith.constant dense<0.000000e+00> : vector<16xf32>
    %494 = vector.multi_reduction <add>, %493, %cst_120 [1] : vector<16x16xf32> to vector<16xf32>
    %495 = vector.shape_cast %494 : vector<16xf32> to vector<16x1xf32>
    %496 = tpu.reciprocal %495 {approx = true} : vector<16x1xf32> -> vector<16x1xf32>
    %497 = vector.broadcast %496 : vector<16x1xf32> to vector<16x16xf32>
    %498 = arith.mulf %493, %497 : vector<16x16xf32>
    %499 = vector.extract_strided_slice %266 {offsets = [8, 0], sizes = [8, 16], strides = [1, 1]} : vector<16x16xf32> to vector<8x16xf32>
    %cst_121 = arith.constant dense<0.000000e+00> : vector<16x8xf32>
    %500 = tpu.matmul %498, %499, %cst_121 {dimension_numbers = #tpu.dot_dimension_numbers<[1], [1], [0], [0], [0, 0, 1, 0], [], []>} : vector<16x16xf32>, vector<8x16xf32>, vector<16x8xf32> -> vector<16x8xf32>
    %c0_122 = arith.constant 0 : index
    %c8_123 = arith.constant 8 : index
    %501 = vector.load %arg9[%c0_122, %c8_123] : memref<1x16xf32, #tpu.memory_space<vmem>>, vector<1x8xf32>
    %502 = vector.broadcast %501 : vector<1x8xf32> to vector<16x8xf32>
    %503 = arith.addf %500, %502 : vector<16x8xf32>
    %cst_124 = arith.constant 0.000000e+00 : f32
    %504 = vector.broadcast %cst_124 : f32 to vector<16x8xf32>
    %505 = arith.maximumf %503, %504 : vector<16x8xf32>
    %c0_125 = arith.constant 0 : index
    %c8_126 = arith.constant 8 : index
    %506 = vector.load %arg17[%c0_125, %c8_126] : memref<16x16xf32, #tpu.memory_space<vmem>>, vector<16x8xf32>
    tpu.vector_store %arg17[%c0_125, %c8_126], %505 {strides = array<i32>} : memref<16x16xf32, #tpu.memory_space<vmem>>, vector<16x8xf32>,
    %c0_127 = arith.constant 0 : index
    %c0_128 = arith.constant 0 : index
    %507 = vector.load %arg17[%c0_127, %c0_128] : memref<16x16xf32, #tpu.memory_space<vmem>>, vector<16x16xf32>
    %c0_129 = arith.constant 0 : index
    %c0_130 = arith.constant 0 : index
    %508 = vector.load %arg12[%c0_129, %c0_130] : memref<1x16xf32, #tpu.memory_space<vmem>>, vector<1x16xf32>
    %cst_131 = arith.constant dense<0.000000e+00> : vector<1x16xf32>
    %509 = tpu.matmul %508, %507, %cst_131 {dimension_numbers = #tpu.dot_dimension_numbers<[1], [1], [0], [0], [0, 0, 1, 0], [], []>} : vector<1x16xf32>, vector<16x16xf32>, vector<1x16xf32> -> vector<1x16xf32>
    %c0_132 = arith.constant 0 : index
    %c0_133 = arith.constant 0 : index
    %510 = vector.load %arg13[%c0_132, %c0_133] : memref<16x1xf32, #tpu.memory_space<vmem>>, vector<16x1xf32>
    %cst_134 = arith.constant dense<0.000000e+00> : vector<16x1xf32>
    %511 = tpu.matmul %507, %510, %cst_134 {dimension_numbers = #tpu.dot_dimension_numbers<[1], [0], [0], [1], [0, 0, 1, 1], [], []>} : vector<16x16xf32>, vector<16x1xf32>, vector<16x1xf32> -> vector<16x1xf32>
    %c0_135 = arith.constant 0 : index
    %512 = memref.load %arg14[%c0_135] : memref<2xf32, #tpu.memory_space<smem>>
    %c1_136 = arith.constant 1 : index
    %513 = memref.load %arg14[%c1_136] : memref<2xf32, #tpu.memory_space<smem>>
    %514 = vector.broadcast %511 : vector<16x1xf32> to vector<16x16xf32>
    %515 = vector.broadcast %509 : vector<1x16xf32> to vector<16x16xf32>
    %516 = arith.addf %514, %515 : vector<16x16xf32>
    %cst_137 = arith.constant 2.000000e-01 : f32
    %517 = vector.broadcast %cst_137 : f32 to vector<16x16xf32>
    %518 = arith.mulf %517, %516 : vector<16x16xf32>
    %cst_138 = arith.constant 0.000000e+00 : f32
    %519 = vector.broadcast %cst_138 : f32 to vector<16x16xf32>
    %520 = arith.maximumf %516, %519 : vector<16x16xf32>
    %cst_139 = arith.constant 8.000000e-01 : f32
    %521 = vector.broadcast %cst_139 : f32 to vector<16x16xf32>
    %522 = arith.mulf %521, %520 : vector<16x16xf32>
    %523 = arith.addf %518, %522 : vector<16x16xf32>
    %524 = vector.broadcast %512 : f32 to vector<16x16xf32>
    %525 = arith.mulf %524, %523 : vector<16x16xf32>
    %526 = arith.addf %525, %16 : vector<16x16xf32>
    %cst_140 = arith.constant dense<0xFF800000> : vector<16xf32>
    %527 = vector.multi_reduction <maximumf>, %526, %cst_140 [1] : vector<16x16xf32> to vector<16xf32>
    %528 = vector.shape_cast %527 : vector<16xf32> to vector<16x1xf32>
    %529 = vector.broadcast %528 : vector<16x1xf32> to vector<16x16xf32>
    %530 = arith.subf %526, %529 : vector<16x16xf32>
    %531 = math.exp %530 : vector<16x16xf32>
    %cst_141 = arith.constant dense<0.000000e+00> : vector<16xf32>
    %532 = vector.multi_reduction <add>, %531, %cst_141 [1] : vector<16x16xf32> to vector<16xf32>
    %533 = vector.shape_cast %532 : vector<16xf32> to vector<16x1xf32>
    %534 = tpu.reciprocal %533 {approx = true} : vector<16x1xf32> -> vector<16x1xf32>
    %535 = vector.broadcast %534 : vector<16x1xf32> to vector<16x16xf32>
    %536 = arith.mulf %531, %535 : vector<16x16xf32>
    %cst_142 = arith.constant dense<0.000000e+00> : vector<1x16xf32>
    %537 = tpu.matmul %509, %536, %cst_142 {dimension_numbers = #tpu.dot_dimension_numbers<[1], [1], [0], [0], [0, 0, 1, 0], [], []>} : vector<1x16xf32>, vector<16x16xf32>, vector<1x16xf32> -> vector<1x16xf32>
    %538 = vector.broadcast %513 : f32 to vector<1x16xf32>
    %539 = arith.addf %537, %538 : vector<1x16xf32>
    %cst_143 = arith.constant 0.000000e+00 : f32
    %540 = vector.broadcast %cst_143 : f32 to vector<1x16xf32>
    %541 = arith.subf %540, %539 : vector<1x16xf32>
    %542 = math.exp %541 : vector<1x16xf32>
    %cst_144 = arith.constant 1.000000e+00 : f32
    %543 = vector.broadcast %cst_144 : f32 to vector<1x16xf32>
    %544 = arith.addf %543, %542 : vector<1x16xf32>
    %cst_145 = arith.constant 1.000000e+00 : f32
    %545 = vector.broadcast %cst_145 : f32 to vector<1x16xf32>
    %546 = arith.divf %545, %544 : vector<1x16xf32>
    %c0_146 = arith.constant 0 : index
    %c0_147 = arith.constant 0 : index
    %547 = vector.load %arg15[%c0_146, %c0_147] : memref<1x16xf32, #tpu.memory_space<vmem>>, vector<1x16xf32>
    tpu.vector_store %arg15[%c0_146, %c0_147], %546 {strides = array<i32>} : memref<1x16xf32, #tpu.memory_space<vmem>>, vector<1x16xf32>,
    return
  }
}

</mosaic_0001>

<bundles_post_ra>
// kernel: gatreg_forward.1
= control target key start
LH: loop header
LB: loop body
LE: loop exit
PB: predicated region body
PF: predicated region fallthrough
CT: control target
= control target key end

     0   :  { %20 = vsyncpa [#allocation6], 0  ;;  %s3608_s0 = inlined_call_operand.vmem [shape: f32[16,8], index: 0, kind: input, shape index: {}]   ;;  %s3609_s1 = inlined_call_operand.vmem [shape: s32[2,32], index: 1, kind: input, shape index: {}]   ;;  %s3610_s2 = inlined_call_operand.vmem [shape: f32[16,8], index: 2, kind: input, shape index: {}]   ;;  %s3611_s3 = inlined_call_operand.vmem [shape: f32[8,16], index: 3, kind: input, shape index: {}]   ;;  %s3612_s4 = inlined_call_operand.vmem [shape: f32[1,16], index: 4, kind: input, shape index: {}]   ;;  %s3613_s5 = inlined_call_operand.vmem [shape: f32[2,16], index: 5, kind: input, shape index: {}]   ;;  %s3614_s6 = inlined_call_operand.vmem [shape: f32[16], index: 6, kind: input, shape index: {}]   ;;  %s3615_s7 = inlined_call_operand.vmem [shape: f32[16,16], index: 7, kind: input, shape index: {}]   ;;  %s3616_s8 = inlined_call_operand.vmem [shape: f32[16,16], index: 8, kind: input, shape index: {}]   ;;  %s3617_s9 = inlined_call_operand.vmem [shape: f32[1,16], index: 9, kind: input, shape index: {}]   ;;  %s3618_s10 = inlined_call_operand.vmem [shape: f32[2,16], index: 10, kind: input, shape index: {}]   ;;  %s3619_s11 = inlined_call_operand.vmem [shape: f32[16], index: 11, kind: input, shape index: {}]   ;;  %s3620_s12 = inlined_call_operand.vmem [shape: f32[1,16], index: 12, kind: input, shape index: {}]   ;;  %s3621_s13 = inlined_call_operand.vmem [shape: f32[16,1], index: 13, kind: input, shape index: {}]   ;;  %s3622_s14 = inlined_call_operand.vmem [shape: f32[2], index: 14, kind: input, shape index: {}]   ;;  %s3623_s15 = inlined_call_operand.hbm [shape: f32[1,16], index: 15, kind: output, shape index: {}]  }
   0x1   :  { %21 = vsyncpa [#allocation8], 0  ;;  %s59_s20 = sshll.u32 %s3619_s11, 4  ;;  %s60_s20 = int_to_ptr.vmem [resolvable:$true] %s59_s20 }
   0x2   :  { %22 = vsyncpa [#allocation5], 0  ;;  %s41_s23 = sshll.u32 %s3614_s6, 4  ;;  %s2860_s24 = scalar_lea.vmem %s60_s20, 16  ;;  %s42_s23 = int_to_ptr.vmem [resolvable:$true] %s41_s23 }
   0x3   :  { %p2861_p0 = scmp.ne.s32.totalorder %s60_s20, %s2860_s24  ;;  %p2865_p1 = scmp.lt.s32.totalorder %s60_s20, %s60_s20 }
   0x4   :  { %p2866_p2 = scmp.lt.s32.totalorder %s2860_s24, %s2860_s24 }
   0x6   :  { %p2867_p3 = por %p2866_p2, %p2865_p1 }
   0x8   :  { %p2868_p4 = pnand %p2867_p3, %p2861_p0 }
   0xa   :  { %2871 = shalt.err (!%p2868_p4)
}
   0xb   :  { %s2924_s25 = smov [#allocation7]   ;;  %s2872_s26 = scalar_lea.vmem %s42_s23, 16 }
   0xc   :  { %62 = dma.vmem_to_smem %s60_s20, 16, %s2924_s25, [#allocation8]  }
   0xd   :  { %p2873_p5 = scmp.ne.s32.totalorder %s42_s23, %s2872_s26  ;;  %p2877_p6 = scmp.lt.s32.totalorder %s42_s23, %s42_s23 }
   0xe   :  { %p2878_p7 = scmp.lt.s32.totalorder %s2872_s26, %s2872_s26 }
  0x10   :  { %p2879_p8 = por %p2878_p7, %p2877_p6 }
  0x12   :  { %p2880_p9 = pnand %p2879_p8, %p2873_p5 }
  0x14   :  { %2883 = shalt.err (!%p2880_p9)
}
  0x15   :  { %s2925_s11 = smov [#allocation4]   ;;  %s73_s28 = sshll.u32 %s3622_s14, 4  ;;  %s74_s28 = int_to_ptr.vmem [resolvable:$true] %s73_s28 }
  0x16   :  { %44 = dma.vmem_to_smem %s42_s23, 16, %s2925_s11, [#allocation6]  }
  0x17   :  { %s2884_s29 = scalar_lea.vmem %s74_s28, 16  ;;  %p2889_p11 = scmp.lt.s32.totalorder %s74_s28, %s74_s28 }
  0x18   :  { %p2885_p10 = scmp.ne.s32.totalorder %s74_s28, %s2884_s29  ;;  %p2890_p12 = scmp.lt.s32.totalorder %s2884_s29, %s2884_s29 }
  0x1a   :  { %p2891_p13 = por %p2890_p12, %p2889_p11 }
  0x1c   :  { %p2892_p0 = pnand %p2891_p13, %p2885_p10 }
  0x1e   :  { %2895 = shalt.err (!%p2892_p0)
}
  0x1f   :  { %s2926_s30 = smov [#allocation9]  }
  0x20   :  { %76 = dma.vmem_to_smem %s74_s28, 16, %s2926_s30, [#allocation8]  }
  0x21   :  { %2918 = dma.done.wait [#allocation6], 16  }
  0x22   :  { %2919 = vsyncadd [#allocation6], 4294967280 }
  0x23   :  { %2920 = dma.done.wait [#allocation8], 32  }
  0x24   :  { %2921 = vsyncadd [#allocation8], 4294967264 }
  0x25   :  { %86 = sfence }
  0x26   :  { %v206_v0 = vld [vmem:[%s3611_s3] sm:$0xff]  ;;  %v205_v2 = vld [vmem:[%s3608_s0 + $0x8] sm:$0xff]  ;;  %vm207_vm0 = vcmask 64512   ;;  %v2927_v5 = vmov 10   ;;  %v2928_v6 = vmov 8   ;;  %v87_v8 = vlaneseq  ;;  %s3195_s11 = sld [smem:[#allocation4 + $0x8]] }
  0x27   :  { %v204_v1 = vld [vmem:[%s3608_s0] sm:$0xff]  ;;  %2597 = vmatprep.subr.mxu1 %v206_v0  ;;  %vm2695_vm1 = vmpackc.low %vm207_vm0, %vm207_vm0  ;;  %2756 = vset.pattern.permute.xlu0 %v2927_v5  ;;  %v290_v7 = vld [vmem:[%s3610_s2 + $0x8] sm:$0xff]  ;;  %v2929_v12 = vmov 0.0   ;;  %vm112_vm4 = vcmask 261120   ;;  %v2930_v19 = vmov 0.0|0.0   ;;  %vm2931_vm8 = vmmov 0  }
  0x28   :  { %2599 = vmatprep.mubr.msk.f32.mxu1 %vm207_vm0, %v204_v1  ;;  %v2694_v3 = vpack.c.bf16 %v205_v2, %v204_v1  ;;  %v289_v4 = vld [vmem:[%s3610_s2] sm:$0xff]  ;;  %2598 = vmatpush3.msra.mxu1 %v206_v0  ;;  %v3062_v9 = vshrl.u32 %v87_v8, 7  ;;  %vm2689_vm5 = vmpackc.low %vm112_vm4, %vm112_vm4  ;;  %v2932_v22 = vmov 13   ;;  %v2933_v23 = vmov 9   ;;  %s3202_s6 = sld [smem:[#allocation4 + $0xa]]  ;;  %s3209_s27 = sld [smem:[#allocation4 + $0xb]] }
  0x29   :  { %2600 = vmatmul.mubr.msk.f32.vlgmr.msra.gmra.mrb[0].mxu1 %vm207_vm0, %v205_v2  ;;  %2754 = vset.pattern.permute.xlu1 %v2928_v6  ;;  %v2452_v11 = vld [vmem:[%s3609_s1] ss:$0 sm:$0xff]  ;;  %v2455_v16 = vld [vmem:[%s3609_s1 + $0x1] ss:$0 sm:$0xff]  ;;  %v2934_v24 = vmov 11   ;;  %vm373_vm9 = vcmask 130048  }
  0x2a   :  { %2696 = vmatprep.subr.msk.bf16.mxu1 %vm2695_vm1, %v2694_v3  ;;  %2606 = vmatprep.mubr.msk.f32.mxu1 %vm207_vm0, %v289_v4  ;;  %v89_v10 = vadd.s32 8, %v3062_v9  ;;  %vm95_vm2 = vcmp.eq.s32.totalorder %v3062_v9, %v2452_v11  ;;  %vm106_vm6 = vcmp.eq.s32.totalorder %v3062_v9, %v2455_v16  ;;  %v2935_v27 = vmov 12   ;;  %v372_v29 = vld [vmem:[%s3613_s5] sm:$0x3]  ;;  %s3188_s5 = sld [smem:[#allocation4 + $0x9]]  ;;  %s3215_s28 = sld [smem:[#allocation4 + $0xc]]  ;;  %vm3348_vm13 = vmpackc.low %vm373_vm9, %vm373_vm9 }
  0x2b   :  { %v2453_v13 = vsel %vm95_vm2, 1.0, %v2929_v12  ;;  %v2456_v17 = vsel %vm106_vm6, 1.0, %v2929_v12  ;;  %v2936_v30 = vmov 14   ;;  %v2937_v31 = vmov 15   ;;  %s3228_s29 = sld [smem:[#allocation4 + $0xd]]  ;;  %s3236_s30 = sld [smem:[#allocation4 + $0xe]] }
  0x2c   :  { %vm96_vm3 = vcmp.eq.s32.totalorder %v89_v10, %v2452_v11  ;;  %vm107_vm7 = vcmp.eq.s32.totalorder %v89_v10, %v2455_v16  ;;  %2594 = vmatprep.mubr.msk.f32.mxu0 %vm112_vm4, %v2456_v17  ;;  %v2938_v32 = vmov 1   ;;  %v2939_v39 = vmov 2   ;;  %s2490_s16 = sld [smem:[#allocation4 + $0xf]]  ;;  %s3267_s17 = sld [smem:[#allocation4 + $0x1]] }
  0x2d   :  { %v2454_v14 = vsel %vm96_vm3, 1.0, %v2929_v12  ;;  %v2457_v18 = vsel %vm107_vm7, 1.0, %v2929_v12  ;;  %v2940_v40 = vmov 0   ;;  %v2941_v41 = vmov 4   ;;  %s3273_s14 = sld [smem:[#allocation4]]  ;;  %s3277_s18 = sld [smem:[#allocation4 + $0x2]] }
  0x2e   :  { %v2688_v15 = vpack.c.bf16 %v2454_v14, %v2453_v13  ;;  %v2942_v42 = vmov 5   ;;  %v3625_v43 = vmov 7   ;;  %v2944_v44 = vmov 3   ;;  %s3279_s19 = sld [smem:[#allocation4 + $0x3]]  ;;  %s3284_s20 = sld [smem:[#allocation4 + $0x4]] }
  0x2f   :  { %2699 = vmatpush3.bf16.xpose.msk.msra.mxu1 %vm2695_vm1, %v2694_v3  ;;  %v3624_v45 = vmov 6   ;;  %v3183_v54 = vsub.s32 1, %v3062_v9  ;;  %v3186_v56 = vsub.s32 0, %v3062_v9  ;;  %v3193_v58 = vsub.s32 2, %v3062_v9  ;;  %s3289_s21 = sld [smem:[#allocation4 + $0x5]]  ;;  %s3295_s22 = sld [smem:[#allocation4 + $0x6]] }
  0x30   :  { %2690 = vmatprep.subr.msk.bf16.mxu0 %vm2689_vm5, %v2688_v15  ;;  %2700 = vmatprep.subr.bf16.mxu1 %v2930_v19  ;;  %v3200_v63 = vsub.s32 3, %v3062_v9  ;;  %v3207_v4 = vsub.s32 4, %v3062_v9  ;;  %v884_v10 = vstv %s3188_s5  ;;  %v862_v16 = vstv %s3195_s11  ;;  %s3300_s0 = sld [smem:[#allocation4 + $0x7]]  ;;  %s2947_s24 = smov 120  }
  0x31   :  { %2693 = vmatpush3.bf16.xpose.msk.msra.mxu0 %vm2689_vm5, %v2688_v15  ;;  %s2948_s11 = smov 8   ;;  %vm1168_vm12 = vcmask 130112   ;;  %s3524_s3 = sld [smem:[#allocation7 + $0x5]]  ;;  %vm2434_vm14 = vcmask 122880  }
  0x32   :  { %s3529_s23 = sld [smem:[#allocation7 + $0x6]] }
  0x36   :  { %2607 = vmatmul.mubr.msk.f32.vlgmr.msra.gmra.mrb[2].mxu1 %vm207_vm0, %v290_v7 }
  0x37   :  { %2613 = vmatprep.mubr.msk.f32.mxu1 %vm2931_vm8, %v2929_v12 }
  0x38   :  { %2595 = vmatmul.mubr.msk.f32.vlgmr.msra.gmra.mrb[0].mxu0 %vm112_vm4, %v2457_v18 }
  0xfc   :  { %v3080_v20 = vpop.f32.mrb[0].mxu1 }
  0xfd   :  { %895 = vperm.xlu0 %2756, %v3080_v20   ;;  %851 = vperm.xlu1 %2754, %v3080_v20   ;;  %v3084_v21 = vpop.f32.mrb[1].mxu1 }
 0x101   :  { %2759 = vset.pattern.permute.xlu0 %v2932_v22  ;;  %2755 = vset.pattern.permute.xlu1 %v2933_v23 }
 0x102   :  { %961 = vperm.xlu0 %2759, %v3080_v20   ;;  %873 = vperm.xlu1 %2755, %v3080_v20  }
 0x106   :  { %2761 = vset.pattern.permute.xlu0 %v2928_v6  ;;  %2757 = vset.pattern.permute.xlu1 %v2934_v24 }
 0x107   :  { %917 = vperm.xlu1 %2757, %v3080_v20   ;;  %847 = vperm.xlu0 %2761, %v3084_v21  }
 0x109   :  { %v3094_v25 = vpop.f32.mrb[2].mxu1 }
 0x10a   :  { %v3096_v26 = vpop.f32.mrb[3].mxu1  ;;  %v879_v57 = vrot.slane %v3094_v25, %v3183_v54  ;;  %v857_v60 = vrot.slane %v3094_v25, %v3186_v56  ;;  %v901_v1 = vrot.slane %v3094_v25, %v3193_v58  ;;  %v923_v7 = vrot.slane %v3094_v25, %v3200_v63 }
 0x10b   :  { %2758 = vset.pattern.permute.xlu1 %v2935_v27  ;;  %2762 = vset.pattern.permute.xlu0 %v2933_v23  ;;  %v2701_v28 = vpack.c.bf16 %v3094_v25, %v3096_v26  ;;  %v3142_v37 = vpop.f32.mrb[0].mxu0 }
 0x10c   :  { %2621 = vmatprep.subr.msk.mxu0 %vm373_vm9, %v3096_v26  ;;  %939 = vperm.xlu1 %2758, %v3080_v20   ;;  %v3144_v38 = vpop.f32.mrb[1].mxu0  ;;  %vm201_vm10 = vcmp.gt.f32.partialorder %v3142_v37, 0.0 }
 0x10d   :  { %869 = vperm.xlu0 %2762, %v3084_v21   ;;  %2622 = vmatpush3.xpose.msk.msra.mxu0 %vm373_vm9, %v3096_v26  ;;  %vm200_vm11 = vcmp.gt.f32.partialorder %v3144_v38, 0.0 }
 0x10e   :  { %2702 = vmatpush3.bf16.msra.mxu1 %v2701_v28  ;;  %v945_v28 = vrot.slane %v3094_v25, %v3207_v4 }
 0x10f   :  { %2616 = vmatprep.subr.msk.mxu1 %vm373_vm9, %v372_v29 }
 0x110   :  { %2760 = vset.pattern.permute.xlu1 %v2936_v30 }
 0x111   :  { %2765 = vset.pattern.permute.xlu0 %v2935_v27  ;;  %2614 = vmatmul.mubr.msk.f32.vlgmr.msra.gmra.mrb[4].mxu1 %vm373_vm9, %v372_v29 }
 0x112   :  { %983 = vperm.xlu1 %2760, %v3080_v20   ;;  %935 = vperm.xlu0 %2765, %v3084_v21  }
 0x113   :  { %2618 = vmatprep.mubr.msk.f32.mxu1 %vm373_vm9, %v3084_v21 }
 0x116   :  { %2763 = vset.pattern.permute.xlu1 %v2927_v5  ;;  %2769 = vset.pattern.permute.xlu0 %v2937_v31 }
 0x117   :  { %891 = vperm.xlu1 %2763, %v3084_v21   ;;  %1001 = vperm.xlu0 %2769, %v3084_v21  }
 0x118   :  { %2617 = vmatpush3.xpose.msk.msra.mxu1 %vm373_vm9, %v372_v29 }
 0x119   :  { %2626 = vmatprep.subr.msk.mxu1 %vm373_vm9, %v3094_v25 }
 0x11b   :  { %2619 = vmatmul.mubr.msk.f32.vlgmr.msra.gmra.mrb[6].mxu1 %vm373_vm9, %v3080_v20  ;;  %2764 = vset.pattern.permute.xlu1 %v2934_v24 }
 0x11c   :  { %2627 = vmatpush3.xpose.msk.msra.mxu1 %vm373_vm9, %v3094_v25  ;;  %913 = vperm.xlu1 %2764, %v3084_v21  }
 0x11d   :  { %2771 = vset.pattern.permute.xlu0 %v2938_v32 }
 0x120   :  { %2766 = vset.pattern.permute.xlu1 %v2932_v22 }
 0x121   :  { %957 = vperm.xlu1 %2766, %v3084_v21  }
 0x125   :  { %2767 = vset.pattern.permute.xlu1 %v2936_v30 }
 0x126   :  { %979 = vperm.xlu1 %2767, %v3084_v21  }
 0x12a   :  { %2768 = vset.pattern.permute.xlu1 %v2937_v31 }
 0x12b   :  { %1005 = vperm.xlu1 %2768, %v3080_v20  }
 0x12f   :  { %2770 = vset.pattern.permute.xlu1 %v2938_v32 }
 0x17c   :  { %v852_v46 = vpop.permute.xlu1 %851  ;;  %v896_v50 = vpop.permute.xlu0 %895 }
 0x17d   :  { %v859_v0 = vadd.f32 %v857_v60, %v852_v46  ;;  %v903_v14 = vadd.f32 %v901_v1, %v896_v50  ;;  %v3223_v50 = vsub.s32 6, %v3062_v9 }
 0x17f   :  { %v861_v15 = vmax.f32 %v859_v0, 0.0  ;;  %v928_v0 = vstv %s3209_s27 }
 0x181   :  { %v874_v47 = vpop.permute.xlu1 %873  ;;  %v3180_v52 = vpop.permute.xlu0 %961  ;;  %v864_v46 = vmul.f32 %v862_v16, %v861_v15 }
 0x182   :  { %v881_v61 = vadd.f32 %v879_v57, %v874_v47 }
 0x184   :  { %v883_v3 = vmax.f32 %v881_v61, 0.0 }
 0x186   :  { %v918_v48 = vpop.permute.xlu1 %917  ;;  %v848_v55 = vpop.permute.xlu0 %847  ;;  %v886_v29 = vmul.f32 %v884_v10, %v883_v3 }
 0x187   :  { %v858_v8 = vadd.f32 %v857_v60, %v848_v55  ;;  %v906_v55 = vstv %s3202_s6 }
 0x18b   :  { %v940_v49 = vpop.permute.xlu1 %939 }
 0x18c   :  { %v870_v62 = vpop.permute.xlu0 %869  ;;  %v947_v47 = vadd.f32 %v945_v28, %v940_v49 }
 0x18d   :  { %v880_v2 = vadd.f32 %v879_v57, %v870_v62  ;;  %v888_v62 = vadd.f32 %v886_v29, %v864_v46 }
 0x18f   :  { %v882_v17 = vmax.f32 %v880_v2, 0.0 }
 0x191   :  { %v3178_v51 = vpop.permute.xlu1 %983  ;;  %v885_v57 = vmul.f32 %v884_v10, %v882_v17  ;;  %v3234_v10 = vsub.s32 7, %v3062_v9 }
 0x193   :  { %v1011_v46 = vrot.slane %v3094_v25, %v3234_v10 }
 0x196   :  { %v892_v53 = vpop.permute.xlu1 %891 }
 0x197   :  { %v902_v11 = vadd.f32 %v901_v1, %v892_v53  ;;  %v936_v53 = vpop.permute.xlu0 %935 }
 0x198   :  { %v946_v2 = vadd.f32 %v945_v28, %v936_v53 }
 0x19a   :  { %v948_v28 = vmax.f32 %v946_v2, 0.0 }
 0x19b   :  { %v914_v59 = vpop.permute.xlu1 %913 }
 0x19c   :  { %v924_v18 = vadd.f32 %v923_v7, %v914_v59 }
 0x19e   :  { %v926_v59 = vmax.f32 %v924_v18, 0.0 }
 0x1a0   :  { %v958_v13 = vpop.permute.xlu1 %957  ;;  %v929_v15 = vmul.f32 %v928_v0, %v926_v59  ;;  %v972_v59 = vstv %s3228_s29  ;;  %s3461_s29 = sld [smem:[#allocation7 + $0xa]] }
 0x1a5   :  { %v980_v60 = vpop.permute.xlu1 %979 }
 0x1e4   :  { %v3140_v33 = vpop.f32.mrb[4].mxu1 }
 0x1e5   :  { %v2615_v34 = vpop.f32.mrb[5].mxu1 }
 0x1e6   :  { %v860_v34 = vmax.f32 %v858_v8, 0.0  ;;  %v989_v8 = vrot.slane %v3094_v25, %v3223_v50 }
 0x1e8   :  { %v863_v1 = vmul.f32 %v862_v16, %v860_v34  ;;  %v990_v34 = vadd.f32 %v989_v8, %v980_v60 }
 0x1ee   :  { %v2620_v35 = vpop.f32.mrb[6].mxu1 }
 0x1ef   :  { %1026 = vperm.xlu0 %2771, %v2620_v35   ;;  %v519_v36 = vpop.f32.mrb[7].mxu1 }
 0x1f0   :  { %1022 = vperm.xlu1 %2770, %v519_v36  }
 0x1f3   :  { %2775 = vset.pattern.permute.xlu0 %v2939_v39 }
 0x1f4   :  { %578 = vperm.xlu0 %2775, %v3080_v20   ;;  %2772 = vset.pattern.permute.xlu1 %v2940_v40 }
 0x1f5   :  { %530 = vperm.xlu1 %2772, %v3084_v21  }
 0x1f8   :  { %2777 = vset.pattern.permute.xlu0 %v2941_v41 }
 0x1f9   :  { %618 = vperm.xlu0 %2777, %v3084_v21   ;;  %2773 = vset.pattern.permute.xlu1 %v2938_v32 }
 0x1fa   :  { %552 = vperm.xlu1 %2773, %v3084_v21  }
 0x1fd   :  { %2780 = vset.pattern.permute.xlu0 %v2942_v42 }
 0x1fe   :  { %644 = vperm.xlu0 %2780, %v3080_v20   ;;  %556 = vperm.xlu1 %2773, %v3080_v20  }
 0x202   :  { %2782 = vset.pattern.permute.xlu0 %v3625_v43  ;;  %2774 = vset.pattern.permute.xlu1 %v2939_v39 }
 0x203   :  { %684 = vperm.xlu0 %2782, %v3084_v21   ;;  %574 = vperm.xlu1 %2774, %v3084_v21  }
 0x207   :  { %2783 = vset.pattern.permute.xlu0 %v2940_v40  ;;  %2776 = vset.pattern.permute.xlu1 %v2944_v44 }
 0x208   :  { %534 = vperm.xlu0 %2783, %v3080_v20   ;;  %596 = vperm.xlu1 %2776, %v3084_v21  }
 0x20c   :  { %711 = vperm.xlu0 %2783, %v2620_v35   ;;  %600 = vperm.xlu1 %2776, %v3080_v20   ;;  %v904_v35 = vmax.f32 %v902_v11, 0.0  ;;  %v887_v11 = vadd.f32 %v885_v57, %v863_v1 }
 0x20e   :  { %v907_v49 = vmul.f32 %v906_v55, %v904_v35  ;;  %v1006_v35 = vpop.permute.xlu1 %1005 }
 0x20f   :  { %v1013_v57 = vadd.f32 %v1011_v46, %v1006_v35 }
 0x210   :  { %2778 = vset.pattern.permute.xlu1 %v2941_v41  ;;  %2789 = vset.pattern.permute.xlu0 %v2934_v24  ;;  %v909_v29 = vadd.f32 %v907_v49, %v887_v11  ;;  %v1016_v11 = vstv %s2490_s16  ;;  %s3471_s16 = sld [smem:[#allocation7 + $0xc]] }
 0x211   :  { %622 = vperm.xlu1 %2778, %v3080_v20  }
 0x215   :  { %2779 = vset.pattern.permute.xlu1 %v2942_v42 }
 0x216   :  { %640 = vperm.xlu1 %2779, %v3084_v21  }
 0x21a   :  { %2781 = vset.pattern.permute.xlu1 %v3624_v45 }
 0x21b   :  { %662 = vperm.xlu1 %2781, %v3084_v21   ;;  %v925_v21 = vadd.f32 %v923_v7, %v918_v48  ;;  %v949_v7 = vmax.f32 %v947_v47, 0.0  ;;  %v931_v47 = vadd.f32 %v929_v15, %v909_v29 }
 0x21d   :  { %v927_v61 = vmax.f32 %v925_v21, 0.0 }
 0x21f   :  { %666 = vperm.xlu1 %2781, %v3080_v20   ;;  %v930_v21 = vmul.f32 %v928_v0, %v927_v61  ;;  %v992_v61 = vmax.f32 %v990_v34, 0.0  ;;  %v994_v0 = vstv %s3236_s30  ;;  %s3465_s30 = sld [smem:[#allocation7 + $0xb]] }
 0x223   :  { %2784 = vset.pattern.permute.xlu1 %v3625_v43 }
 0x224   :  { %688 = vperm.xlu1 %2784, %v3080_v20   ;;  %v3218_v20 = vsub.s32 5, %v3062_v9 }
 0x226   :  { %v967_v48 = vrot.slane %v3094_v25, %v3218_v20 }
 0x228   :  { %2785 = vset.pattern.permute.xlu1 %v2940_v40  ;;  %v968_v17 = vadd.f32 %v967_v48, %v958_v13  ;;  %v969_v18 = vadd.f32 %v967_v48, %v3180_v52  ;;  %v1002_v52 = vpop.permute.xlu0 %1001 }
 0x229   :  { %706 = vperm.xlu1 %2785, %v519_v36   ;;  %v905_v36 = vmax.f32 %v903_v14, 0.0  ;;  %v950_v14 = vstv %s3215_s28  ;;  %v1012_v1 = vadd.f32 %v1011_v46, %v1002_v52  ;;  %v2946_v52 = vmov -1e+30   ;;  %s3457_s28 = sld [smem:[#allocation7 + $0x8]] }
 0x22a   :  { %v952_v9 = vmul.f32 %v950_v14, %v949_v7  ;;  %v970_v53 = vmax.f32 %v968_v17, 0.0  ;;  %v971_v13 = vmax.f32 %v969_v18, 0.0  ;;  %v951_v48 = vmul.f32 %v950_v14, %v948_v28 }
 0x22b   :  { %v908_v3 = vmul.f32 %v906_v55, %v905_v36  ;;  %v991_v36 = vadd.f32 %v989_v8, %v3178_v51  ;;  %v995_v7 = vmul.f32 %v994_v0, %v992_v61  ;;  %v1014_v15 = vmax.f32 %v1012_v1, 0.0 }
 0x22c   :  { %v953_v2 = vadd.f32 %v951_v48, %v931_v47  ;;  %v973_v51 = vmul.f32 %v972_v59, %v970_v53  ;;  %v974_v49 = vmul.f32 %v972_v59, %v971_v13  ;;  %v1032_v14 = vrot.slane %v3140_v33, %v3183_v54 }
 0x22d   :  { %2786 = vset.pattern.permute.xlu1 %v2928_v6  ;;  %v910_v16 = vadd.f32 %v908_v3, %v888_v62  ;;  %v993_v62 = vmax.f32 %v991_v36, 0.0  ;;  %v1015_v3 = vmax.f32 %v1013_v57, 0.0  ;;  %v1017_v29 = vmul.f32 %v1016_v11, %v1014_v15 }
 0x22e   :  { %v975_v17 = vadd.f32 %v973_v51, %v953_v2  ;;  %v3249_v57 = vsel %vm201_vm10, 0.0, %v2946_v52  ;;  %v3251_v48 = vsel %vm200_vm11, 0.0, %v2946_v52 }
 0x22f   :  { %v932_v55 = vadd.f32 %v930_v21, %v910_v16  ;;  %v996_v25 = vmul.f32 %v994_v0, %v993_v62  ;;  %v1018_v18 = vmul.f32 %v1016_v11, %v1015_v3  ;;  %v562_v11 = vrot.slane %v3096_v26, %v3183_v54 }
 0x230   :  { %v997_v21 = vadd.f32 %v995_v7, %v975_v17  ;;  %v540_v17 = vrot.slane %v3096_v26, %v3186_v56 }
 0x231   :  { %v954_v60 = vadd.f32 %v952_v9, %v932_v55 }
 0x232   :  { %v1019_v35 = vadd.f32 %v1017_v29, %v997_v21 }
 0x233   :  { %v976_v8 = vadd.f32 %v974_v49, %v954_v60 }
 0x234   :  { %v1037_v55 = vmul.f32 0.8, %v1019_v35 }
 0x235   :  { %v998_v16 = vadd.f32 %v996_v25, %v976_v8 }
 0x237   :  { %v1020_v28 = vadd.f32 %v1018_v18, %v998_v16  ;;  %v584_v18 = vrot.slane %v3096_v26, %v3193_v58 }
 0x239   :  { %v1038_v53 = vmul.f32 0.8, %v1020_v28 }
 0x26e   :  { %v1027_v34 = vpop.permute.xlu0 %1026 }
 0x26f   :  { %v1034_v36 = vadd.f32 %v1032_v14, %v1027_v34  ;;  %v1023_v9 = vpop.permute.xlu1 %1022  ;;  %v606_v34 = vrot.slane %v3096_v26, %v3200_v63 }
 0x270   :  { %v1033_v46 = vadd.f32 %v1032_v14, %v1023_v9 }
 0x271   :  { %v1036_v47 = vmul.f32 0.2, %v1034_v36 }
 0x272   :  { %v1035_v13 = vmul.f32 0.2, %v1033_v46  ;;  %v567_v46 = vstv %s3267_s17  ;;  %s3477_s17 = sld [smem:[#allocation7 + $0xd]] }
 0x273   :  { %v1040_v59 = vadd.f32 %v1038_v53, %v1036_v47  ;;  %v579_v61 = vpop.permute.xlu0 %578 }
 0x274   :  { %v1039_v62 = vadd.f32 %v1037_v55, %v1035_v13  ;;  %v531_v60 = vpop.permute.xlu1 %530  ;;  %v586_v52 = vadd.f32 %v584_v18, %v579_v61 }
 0x275   :  { %v3254_v0 = vadd.f32 %v1040_v59, %v3249_v57  ;;  %v541_v14 = vadd.f32 %v540_v17, %v531_v60  ;;  %v628_v60 = vrot.slane %v3096_v26, %v3207_v4 }
 0x276   :  { %v3257_v37 = vadd.f32 %v1039_v62, %v3251_v48  ;;  %v545_v62 = vstv %s3273_s14  ;;  %s3483_s14 = sld [smem:[#allocation7 + $0xe]] }
 0x277   :  { %v1046_v38 = vsel %vm373_vm9, %v3254_v0, -inf  ;;  %v543_v13 = vmax.f32 %v541_v14, 0.0 }
 0x278   :  { %v619_v1 = vpop.permute.xlu0 %618  ;;  %1047 = vmax.xlane.f32.xlu0 %v1046_v38  ;;  %v1043_v2 = vsel %vm373_vm9, %v3257_v37, -inf }
 0x279   :  { %v553_v51 = vpop.permute.xlu1 %552  ;;  %1044 = vmax.xlane.f32.xlu1 %v1043_v2  ;;  %v650_v2 = vrot.slane %v3096_v26, %v3218_v20  ;;  %v629_v61 = vadd.f32 %v628_v60, %v619_v1  ;;  %v672_v1 = vrot.slane %v3096_v26, %v3223_v50 }
 0x27a   :  { %v563_v21 = vadd.f32 %v562_v11, %v553_v51 }
 0x27b   :  { %v631_v43 = vmax.f32 %v629_v61, 0.0 }
 0x27c   :  { %v565_v36 = vmax.f32 %v563_v21, 0.0  ;;  %v588_v21 = vmax.f32 %v586_v52, 0.0  ;;  %v655_v52 = vstv %s3289_s21  ;;  %s3509_s21 = sld [smem:[#allocation7 + $0x2]] }
 0x27d   :  { %v3263_v49 = vpop.permute.xlu0 %644  ;;  %v557_v3 = vpop.permute.xlu1 %556 }
 0x27e   :  { %v564_v35 = vadd.f32 %v562_v11, %v557_v3  ;;  %v568_v38 = vmul.f32 %v567_v46, %v565_v36  ;;  %v589_v3 = vstv %s3277_s18  ;;  %s2523_s18 = sld [smem:[#allocation7 + $0xf]] }
 0x280   :  { %v566_v59 = vmax.f32 %v564_v35, 0.0 }
 0x282   :  { %v575_v7 = vpop.permute.xlu1 %574  ;;  %v3265_v25 = vpop.permute.xlu0 %684 }
 0x283   :  { %v585_v28 = vadd.f32 %v584_v18, %v575_v7 }
 0x285   :  { %v587_v55 = vmax.f32 %v585_v28, 0.0 }
 0x287   :  { %v597_v8 = vpop.permute.xlu1 %596  ;;  %v535_v15 = vpop.permute.xlu0 %534 }
 0x288   :  { %v542_v29 = vadd.f32 %v540_v17, %v535_v15  ;;  %v607_v9 = vadd.f32 %v606_v34, %v597_v8  ;;  %v611_v8 = vstv %s3279_s19  ;;  %v590_v15 = vmul.f32 %v589_v3, %v587_v55  ;;  %s3501_s19 = sld [smem:[#allocation7]] }
 0x289   :  { %v546_v17 = vmul.f32 %v545_v62, %v543_v13  ;;  %v633_v55 = vstv %s3284_s20  ;;  %s3503_s20 = sld [smem:[#allocation7 + $0x1]] }
 0x28a   :  { %v544_v47 = vmax.f32 %v542_v29, 0.0  ;;  %v609_v51 = vmax.f32 %v607_v9, 0.0  ;;  %v569_v29 = vmul.f32 %v567_v46, %v566_v59 }
 0x28b   :  { %v601_v16 = vpop.permute.xlu1 %600  ;;  %v570_v35 = vadd.f32 %v568_v38, %v546_v17 }
 0x28c   :  { %v547_v7 = vmul.f32 %v545_v62, %v544_v47  ;;  %v608_v11 = vadd.f32 %v606_v34, %v601_v16  ;;  %v612_v36 = vmul.f32 %v611_v8, %v609_v51  ;;  %v591_v34 = vmul.f32 %v589_v3, %v588_v21 }
 0x28d   :  { %v592_v47 = vadd.f32 %v590_v15, %v570_v35 }
 0x28e   :  { %v571_v45 = vadd.f32 %v569_v29, %v547_v7  ;;  %v610_v9 = vmax.f32 %v608_v11, 0.0  ;;  %v677_v7 = vstv %s3295_s22  ;;  %v634_v11 = vmul.f32 %v633_v55, %v631_v43  ;;  %s3513_s22 = sld [smem:[#allocation7 + $0x3]] }
 0x28f   :  { %v614_v59 = vadd.f32 %v612_v36, %v592_v47 }
 0x290   :  { %v623_v53 = vpop.permute.xlu1 %622  ;;  %v593_v38 = vadd.f32 %v591_v34, %v571_v45  ;;  %v613_v51 = vmul.f32 %v611_v8, %v610_v9 }
 0x291   :  { %v630_v14 = vadd.f32 %v628_v60, %v623_v53  ;;  %v694_v53 = vrot.slane %v3096_v26, %v3234_v10  ;;  %v652_v60 = vadd.f32 %v650_v2, %v3263_v49  ;;  %v636_v21 = vadd.f32 %v634_v11, %v614_v59 }
 0x292   :  { %v615_v26 = vadd.f32 %v613_v51, %v593_v38  ;;  %v699_v49 = vstv %s3300_s0  ;;  %s3520_s0 = sld [smem:[#allocation7 + $0x4]] }
 0x293   :  { %v632_v13 = vmax.f32 %v630_v14, 0.0  ;;  %v695_v3 = vadd.f32 %v694_v53, %v3265_v25 }
 0x295   :  { %v641_v18 = vpop.permute.xlu1 %640  ;;  %v635_v17 = vmul.f32 %v633_v55, %v632_v13  ;;  %v697_v35 = vmax.f32 %v695_v3, 0.0  ;;  %v717_v55 = vrot.slane %v3140_v33, %v3186_v56 }
 0x296   :  { %v651_v28 = vadd.f32 %v650_v2, %v641_v18 }
 0x297   :  { %v637_v45 = vadd.f32 %v635_v17, %v615_v26  ;;  %v700_v25 = vmul.f32 %v699_v49, %v697_v35 }
 0x298   :  { %v653_v16 = vmax.f32 %v651_v28, 0.0  ;;  %v654_v28 = vmax.f32 %v652_v60, 0.0 }
 0x29a   :  { %v663_v46 = vpop.permute.xlu1 %662  ;;  %v656_v61 = vmul.f32 %v655_v52, %v653_v16  ;;  %v657_v9 = vmul.f32 %v655_v52, %v654_v28  ;;  %v712_v16 = vpop.permute.xlu0 %711 }
 0x29b   :  { %v673_v62 = vadd.f32 %v672_v1, %v663_v46  ;;  %v719_v59 = vadd.f32 %v717_v55, %v712_v16 }
 0x29c   :  { %v658_v36 = vadd.f32 %v656_v61, %v636_v21  ;;  %v659_v13 = vadd.f32 %v657_v9, %v637_v45 }
 0x29d   :  { %v675_v15 = vmax.f32 %v673_v62, 0.0 }
 0x29e   :  { %v667_v18 = vpop.permute.xlu1 %666 }
 0x29f   :  { %v678_v29 = vmul.f32 %v677_v7, %v675_v15  ;;  %v674_v14 = vadd.f32 %v672_v1, %v667_v18  ;;  %v721_v15 = vmul.f32 0.2, %v719_v59 }
 0x2a1   :  { %v676_v47 = vmax.f32 %v674_v14, 0.0  ;;  %v680_v2 = vadd.f32 %v678_v29, %v658_v36 }
 0x2a3   :  { %v689_v8 = vpop.permute.xlu1 %688  ;;  %v679_v43 = vmul.f32 %v677_v7, %v676_v47  ;;  %v702_v1 = vadd.f32 %v700_v25, %v680_v2 }
 0x2a4   :  { %v696_v34 = vadd.f32 %v694_v53, %v689_v8 }
 0x2a5   :  { %v681_v62 = vadd.f32 %v679_v43, %v659_v13  ;;  %v722_v61 = vmul.f32 0.8, %v702_v1 }
 0x2a6   :  { %v698_v46 = vmax.f32 %v696_v34, 0.0 }
 0x2a8   :  { %v701_v60 = vmul.f32 %v699_v49, %v698_v46  ;;  %v707_v38 = vpop.permute.xlu1 %706  ;;  %v2491_v46 = vld [vmem:[%s3612_s4] ss:$0 sm:$0xff]  ;;  %s3534_s4 = sld [smem:[#allocation7 + $0x7]] }
 0x2a9   :  { %v718_v51 = vadd.f32 %v717_v55, %v707_v38 }
 0x2aa   :  { %v703_v11 = vadd.f32 %v701_v60, %v681_v62 }
 0x2ab   :  { %v720_v3 = vmul.f32 0.2, %v718_v51 }
 0x2ac   :  { %v723_v52 = vmul.f32 0.8, %v703_v11 }
 0x2ad   :  { %v724_v7 = vadd.f32 %v722_v61, %v720_v3 }
 0x2ae   :  { %v725_v53 = vadd.f32 %v723_v52, %v721_v15 }
 0x2af   :  { %v726_v17 = vadd.f32 %v724_v7, %v3251_v48 }
 0x2b0   :  { %v727_v18 = vadd.f32 %v725_v53, %v3249_v57  ;;  %v1173_v53 = vld [vmem:[%s3616_s8] sm:$0xff] }
 0x2b1   :  { %v728_v33 = vsel %vm373_vm9, %v726_v17, -inf }
 0x2b2   :  { %729 = vmax.xlane.f32.xlu1 %v728_v33  ;;  %v731_v21 = vsel %vm373_vm9, %v727_v18, -inf }
 0x2b3   :  { %732 = vmax.xlane.f32.xlu0 %v731_v21 }
 0x305   :  { %v1048_v29 = vpop.xlane.xlu0 %1047 }
 0x306   :  { %v1050_v14 = vsub.f32 %v3254_v0, %v1048_v29  ;;  %v1045_v28 = vpop.xlane.xlu1 %1044 }
 0x307   :  { %v1049_v26 = vsub.f32 %v3257_v37, %v1045_v28 }
 0x308   :  { %v1053_v35 = vmul.f32 1.442695, %v1050_v14 }
 0x309   :  { %v1051_v36 = vmul.f32 1.442695, %v1049_v26 }
 0x30a   :  { %2816 = vpow2.f32 %v1053_v35 }
 0x30b   :  { %2818 = vpow2.f32 %v1051_v36  ;;  %v1256_v36 = vld [vmem:[%s3615_s7] sm:$0xff] }
 0x314   :  { %v2817_v47 = vpop.eup %2816 }
 0x315   :  { %v2819_v49 = vpop.eup %2818  ;;  %v1058_v45 = vsel %vm373_vm9, %v2817_v47, 0.0 }
 0x316   :  { %1059 = vadd.xlane.f32.xlu0 %v1058_v45  ;;  %v1055_v2 = vsel %vm373_vm9, %v2819_v49, 0.0 }
 0x317   :  { %1056 = vadd.xlane.f32.xlu1 %v1055_v2 }
 0x33f   :  { %v730_v8 = vpop.xlane.xlu1 %729 }
 0x340   :  { %v734_v9 = vsub.f32 %v726_v17, %v730_v8  ;;  %v733_v43 = vpop.xlane.xlu0 %732  ;;  %v1174_v17 = vld [vmem:[%s3616_s8 + $0x8] sm:$0xff]  ;;  %s2949_s8 = smov [#allocation10]  }
 0x341   :  { %v735_v34 = vsub.f32 %v727_v18, %v733_v43  ;;  %v2703_v18 = vpack.c.bf16 %v1174_v17, %v1173_v53  ;;  %s2442_s6 = sshll.u32 %s2949_s8, 4  ;;  %s2443_s6 = int_to_ptr.vmem [resolvable:$true] %s2442_s6 }
 0x342   :  { %v736_v0 = vmul.f32 1.442695, %v734_v9  ;;  %s2900_s27 = scalar_lea.vmem %s2443_s6, 32  ;;  %p2901_p2 = scmp.lt.s32.totalorder %s2443_s6, %s2443_s6 }
 0x343   :  { %v738_v25 = vmul.f32 1.442695, %v735_v34  ;;  %2704 = vmatprep.subr.bf16.mxu0 %v2703_v18 }
 0x344   :  { %2820 = vpow2.f32 %v736_v0 }
 0x345   :  { %2822 = vpow2.f32 %v738_v25 }
 0x34e   :  { %v2821_v37 = vpop.eup %2820 }
 0x34f   :  { %v2823_v16 = vpop.eup %2822  ;;  %v740_v55 = vsel %vm373_vm9, %v2821_v37, 0.0 }
 0x350   :  { %741 = vadd.xlane.f32.xlu1 %v740_v55  ;;  %v743_v13 = vsel %vm373_vm9, %v2823_v16, 0.0  ;;  %v1257_v55 = vld [vmem:[%s3615_s7 + $0x8] sm:$0xff]  ;;  %s2896_s7 = scalar_lea.vmem %s2443_s6, 16 }
 0x351   :  { %744 = vadd.xlane.f32.xlu0 %v743_v13  ;;  %p2897_p1 = scmp.ne.s32.totalorder %s2443_s6, %s2896_s7  ;;  %p2902_p3 = scmp.lt.s32.totalorder %s2900_s27, %s2896_s7 }
 0x353   :  { %p2903_p4 = por %p2902_p3, %p2901_p2 }
 0x355   :  { %p2904_p5 = pnand %p2903_p4, %p2897_p1 }
 0x361   :  { %1071 = vrot.lane.b32.xlu1 %v2491_v46, %s2947_s24 }
 0x3a3   :  { %v1060_v1 = vpop.xlane.xlu0 %1059 }
 0x3a4   :  { %2824 = vrcp.f32 %v1060_v1  ;;  %v1057_v59 = vpop.xlane.xlu1 %1056 }
 0x3a5   :  { %2826 = vrcp.f32 %v1057_v59 }
 0x3ae   :  { %v2825_v62 = vpop.eup %2824 }
 0x3af   :  { %v2827_v60 = vpop.eup %2826  ;;  %v1064_v51 = vmul.f32 %v2825_v62, %v2817_v47  ;;  %v1339_v62 = vld [vmem:[%s3618_s10] sm:$0x3]  ;;  %s2517_s10 = sld [smem:[#allocation7 + $0x9]] }
 0x3b0   :  { %v1063_v38 = vmul.f32 %v2827_v60, %v2819_v49 }
 0x3b2   :  { %2628 = vmatprep.mubr.msk.f32.mxu1 %vm373_vm9, %v1063_v38 }
 0x3b3   :  { %2629 = vmatmul.mubr.msk.f32.vlgmr.msra.gmra.mrb[8].mxu1 %vm373_vm9, %v1064_v51 }
 0x3b4   :  { %2642 = vmatprep.mubr.msk.f32.mxu1 %vm373_vm9, %v1256_v36  ;;  %v1828_v36 = vstv %s3457_s28 }
 0x3dd   :  { %v742_v11 = vpop.xlane.xlu1 %741 }
 0x3de   :  { %2828 = vrcp.f32 %v742_v11  ;;  %v745_v3 = vpop.xlane.xlu0 %744 }
 0x3df   :  { %2830 = vrcp.f32 %v745_v3 }
 0x3e1   :  { %v1072_v33 = vpop.permute.xlu1 %1071 }
 0x3e8   :  { %v2829_v61 = vpop.eup %2828 }
 0x3e9   :  { %v2831_v15 = vpop.eup %2830  ;;  %v748_v52 = vmul.f32 %v2829_v61, %v2821_v37 }
 0x3ea   :  { %v749_v7 = vmul.f32 %v2831_v15, %v2823_v16 }
 0x3eb   :  { %2623 = vmatprep.mubr.msk.f32.mxu0 %vm373_vm9, %v748_v52 }
 0x3ec   :  { %2624 = vmatmul.mubr.msk.f32.vlgmr.msra.gmra.mrb[2].mxu0 %vm373_vm9, %v749_v7 }
 0x3ed   :  { %2706 = vmatpush3.bf16.msra.mxu0 %v2703_v18 }
 0x3ee   :  { %2713 = vmatprep.subr.bf16.mxu0 %v2930_v19 }
 0x486   :  { %v2630_v21 = vpop.f32.mrb[8].mxu1 }
 0x487   :  { %v1155_v29 = vadd.f32 %v2630_v21, %v1072_v33  ;;  %v1149_v14 = vpop.f32.mrb[9].mxu1 }
 0x488   :  { %v1150_v28 = vadd.f32 %v1149_v14, %v1072_v33 }
 0x489   :  { %v1159_v26 = vmax.f32 %v1155_v29, 0.0 }
 0x48a   :  { %v1158_v35 = vmax.f32 %v1150_v28, 0.0  ;;  %v1850_v28 = vstv %s2517_s10 }
 0x48b   :  { %1164 = vrot.lane.b32.xlu1 %v1159_v26, %s2948_s11 }
 0x48c   :  { %1162 = vrot.lane.b32.xlu0 %v1158_v35, %s2948_s11 }
 0x4bf   :  { %v2625_v47 = vpop.f32.mrb[2].mxu0 }
 0x4c0   :  { %v838_v49 = vadd.f32 %v2625_v47, %v2491_v46  ;;  %v832_v45 = vpop.f32.mrb[3].mxu0 }
 0x4c1   :  { %v833_v2 = vadd.f32 %v2491_v46, %v832_v45  ;;  %v1872_v45 = vstv %s3461_s29 }
 0x4c2   :  { %v842_v8 = vmax.f32 %v838_v49, 0.0 }
 0x4c3   :  { %v841_v9 = vmax.f32 %v833_v2, 0.0 }
 0x4c4   :  { %844 = vst.msk [vmem:[#allocation2 + $0x8] sm:$0xff] %vm207_vm0, %v842_v8 }
 0x4c5   :  { %843 = vst.msk [vmem:[#allocation2] sm:$0xff] %vm207_vm0, %v841_v9 }
 0x4fd   :  { %v1165_v43 = vpop.permute.xlu1 %1164 }
 0x4fe   :  { %1170 = vst.msk [vmem:[#allocation2 + $0x8] sm:$0xff] %vm1168_vm12, %v1165_v43  ;;  %v1163_v34 = vpop.permute.xlu0 %1162 }
 0x4ff   :  { %1169 = vst.msk [vmem:[#allocation2] sm:$0xff] %vm1168_vm12, %v1163_v34 }
 0x505   :  { %v1172_v0 = vld [vmem:[#allocation2 + $0x8] sm:$0xff] }
 0x506   :  { %v1171_v25 = vld [vmem:[#allocation2] sm:$0xff] }
 0x507   :  { %2635 = vmatprep.mubr.msk.f32.mxu0 %vm373_vm9, %v1171_v25  ;;  %v2707_v16 = vpack.c.bf16 %v1172_v0, %v1171_v25 }
 0x508   :  { %2636 = vmatmul.mubr.msk.f32.vlgmr.msra.gmra.mrb[4].mxu0 %vm373_vm9, %v1172_v0 }
 0x509   :  { %2709 = vmatprep.subr.msk.bf16.mxu1 %vm3348_vm13, %v2707_v16  ;;  %2649 = vmatprep.mubr.msk.f32.mxu0 %vm2931_vm8, %v2929_v12 }
 0x50a   :  { %2712 = vmatpush3.bf16.xpose.msk.msra.mxu1 %vm3348_vm13, %v2707_v16 }
 0x511   :  { %2643 = vmatmul.mubr.msk.f32.vlgmr.msra.gmra.mrb[10].mxu1 %vm373_vm9, %v1257_v55 }
 0x5db   :  { %v3364_v13 = vpop.f32.mrb[4].mxu0 }
 0x5dc   :  { %1883 = vperm.xlu0 %2789, %v3364_v13   ;;  %1817 = vperm.xlu1 %2786, %v3364_v13   ;;  %v3368_v46 = vpop.f32.mrb[5].mxu0 }
 0x5e0   :  { %2793 = vset.pattern.permute.xlu0 %v2933_v23  ;;  %2787 = vset.pattern.permute.xlu1 %v2933_v23 }
 0x5e1   :  { %1839 = vperm.xlu1 %2787, %v3364_v13   ;;  %1835 = vperm.xlu0 %2793, %v3368_v46  }
 0x5e4   :  { %v3374_v1 = vpop.f32.mrb[10].mxu1 }
 0x5e5   :  { %v3376_v59 = vpop.f32.mrb[11].mxu1  ;;  %2788 = vset.pattern.permute.xlu1 %v2927_v5  ;;  %2794 = vset.pattern.permute.xlu0 %v2927_v5  ;;  %v1823_v11 = vrot.slane %v3374_v1, %v3186_v56  ;;  %v1845_v61 = vrot.slane %v3374_v1, %v3183_v54  ;;  %v1867_v52 = vrot.slane %v3374_v1, %v3193_v58 }
 0x5e6   :  { %2657 = vmatprep.subr.msk.mxu1 %vm373_vm9, %v3376_v59  ;;  %1861 = vperm.xlu1 %2788, %v3364_v13   ;;  %v2714_v23 = vpack.c.bf16 %v3374_v1, %v3376_v59  ;;  %v1889_v14 = vrot.slane %v3374_v1, %v3200_v63  ;;  %v1911_v2 = vrot.slane %v3374_v1, %v3207_v4 }
 0x5e7   :  { %1857 = vperm.xlu0 %2794, %v3368_v46   ;;  %2658 = vmatpush3.xpose.msk.msra.mxu1 %vm373_vm9, %v3376_v59 }
 0x5e8   :  { %2715 = vmatpush3.bf16.msra.mxu0 %v2714_v23  ;;  %2716 = vmatprep.subr.bf16.mxu1 %v2930_v19 }
 0x5e9   :  { %2652 = vmatprep.subr.msk.mxu0 %vm373_vm9, %v1339_v62 }
 0x5ea   :  { %2790 = vset.pattern.permute.xlu1 %v2935_v27 }
 0x5eb   :  { %2797 = vset.pattern.permute.xlu0 %v2932_v22  ;;  %2650 = vmatmul.mubr.msk.f32.vlgmr.msra.gmra.mrb[6].mxu0 %vm373_vm9, %v1339_v62 }
 0x5ec   :  { %1905 = vperm.xlu1 %2790, %v3364_v13   ;;  %1923 = vperm.xlu0 %2797, %v3368_v46  }
 0x5ed   :  { %2654 = vmatprep.mubr.msk.f32.mxu0 %vm373_vm9, %v3368_v46 }
 0x5f0   :  { %2791 = vset.pattern.permute.xlu1 %v2932_v22  ;;  %2798 = vset.pattern.permute.xlu0 %v2936_v30 }
 0x5f1   :  { %1927 = vperm.xlu1 %2791, %v3364_v13   ;;  %1949 = vperm.xlu0 %2798, %v3364_v13  }
 0x5f2   :  { %2653 = vmatpush3.xpose.msk.msra.mxu0 %vm373_vm9, %v1339_v62 }
 0x5f3   :  { %2662 = vmatprep.subr.msk.mxu0 %vm373_vm9, %v3374_v1 }
 0x5f5   :  { %2792 = vset.pattern.permute.xlu1 %v2928_v6  ;;  %2655 = vmatmul.mubr.msk.f32.vlgmr.msra.gmra.mrb[8].mxu0 %vm373_vm9, %v3364_v13 }
 0x5f6   :  { %1813 = vperm.xlu1 %2792, %v3368_v46   ;;  %2663 = vmatpush3.xpose.msk.msra.mxu0 %vm373_vm9, %v3374_v1 }
 0x5f7   :  { %2801 = vset.pattern.permute.xlu0 %v2938_v32 }
 0x5fa   :  { %2795 = vset.pattern.permute.xlu1 %v2934_v24 }
 0x5fb   :  { %1879 = vperm.xlu1 %2795, %v3368_v46  }
 0x5ff   :  { %2796 = vset.pattern.permute.xlu1 %v2935_v27  ;;  %v3629_v27 = vmov 7  }
 0x600   :  { %1901 = vperm.xlu1 %2796, %v3368_v46  }
 0x604   :  { %2799 = vset.pattern.permute.xlu1 %v2936_v30  ;;  %v3630_v30 = vmov 6  }
 0x605   :  { %1945 = vperm.xlu1 %2799, %v3368_v46  }
 0x609   :  { %2800 = vset.pattern.permute.xlu1 %v2937_v31 }
 0x60a   :  { %1967 = vperm.xlu1 %2800, %v3368_v46  }
 0x60e   :  { %1971 = vperm.xlu1 %2800, %v3364_v13  }
 0x612   :  { %2802 = vset.pattern.permute.xlu1 %v2938_v32 }
 0x65b   :  { %v1818_v31 = vpop.permute.xlu1 %1817  ;;  %v1884_v60 = vpop.permute.xlu0 %1883 }
 0x65c   :  { %v1825_v53 = vadd.f32 %v1823_v11, %v1818_v31  ;;  %v1891_v43 = vadd.f32 %v1889_v14, %v1884_v60 }
 0x65e   :  { %v1827_v47 = vmax.f32 %v1825_v53, 0.0 }
 0x660   :  { %v1840_v32 = vpop.permute.xlu1 %1839  ;;  %v1836_v51 = vpop.permute.xlu0 %1835 }
 0x661   :  { %v1847_v15 = vadd.f32 %v1845_v61, %v1840_v32  ;;  %v1846_v7 = vadd.f32 %v1845_v61, %v1836_v51  ;;  %v1894_v32 = vstv %s3465_s30  ;;  %v1955_v51 = vrot.slane %v3374_v1, %v3223_v50 }
 0x663   :  { %v1849_v29 = vmax.f32 %v1847_v15, 0.0  ;;  %v1848_v26 = vmax.f32 %v1846_v7, 0.0 }
 0x665   :  { %v1852_v34 = vmul.f32 %v1850_v28, %v1849_v29  ;;  %v1851_v0 = vmul.f32 %v1850_v28, %v1848_v26  ;;  %v1938_v28 = vstv %s3477_s17 }
 0x666   :  { %v1858_v18 = vpop.permute.xlu0 %1857 }
 0x667   :  { %v1868_v35 = vadd.f32 %v1867_v52, %v1858_v18 }
 0x669   :  { %v1870_v25 = vmax.f32 %v1868_v35, 0.0 }
 0x66b   :  { %v1924_v16 = vpop.permute.xlu0 %1923 }
 0x6be   :  { %v3424_v5 = vpop.f32.mrb[6].mxu0 }
 0x6bf   :  { %v2651_v6 = vpop.f32.mrb[7].mxu0 }
 0x6c0   :  { %v1933_v6 = vrot.slane %v3374_v1, %v3218_v20 }
 0x6c8   :  { %v2656_v22 = vpop.f32.mrb[8].mxu0 }
 0x6c9   :  { %1992 = vperm.xlu1 %2802, %v2656_v22   ;;  %v1485_v24 = vpop.f32.mrb[9].mxu0 }
 0x6ca   :  { %1988 = vperm.xlu0 %2801, %v1485_v24  }
 0x6cd   :  { %2803 = vset.pattern.permute.xlu1 %v2940_v40 }
 0x6ce   :  { %1496 = vperm.xlu1 %2803, %v3368_v46   ;;  %1518 = vperm.xlu0 %2801, %v3368_v46  }
 0x6d2   :  { %1500 = vperm.xlu1 %2803, %v3364_v13   ;;  %1522 = vperm.xlu0 %2801, %v3364_v13  }
 0x6d6   :  { %2804 = vset.pattern.permute.xlu1 %v2939_v39  ;;  %2805 = vset.pattern.permute.xlu0 %v2939_v39  ;;  %v1862_v39 = vpop.permute.xlu1 %1861 }
 0x6d7   :  { %1540 = vperm.xlu1 %2804, %v3368_v46   ;;  %1544 = vperm.xlu0 %2805, %v3364_v13   ;;  %v1869_v17 = vadd.f32 %v1867_v52, %v1862_v39  ;;  %v1873_v39 = vmul.f32 %v1872_v45, %v1870_v25 }
 0x6d9   :  { %v1871_v49 = vmax.f32 %v1869_v17, 0.0 }
 0x6db   :  { %2806 = vset.pattern.permute.xlu1 %v2944_v44  ;;  %2807 = vset.pattern.permute.xlu0 %v2941_v41  ;;  %v1874_v23 = vmul.f32 %v1872_v45, %v1871_v49 }
 0x6dc   :  { %1562 = vperm.xlu1 %2806, %v3368_v46   ;;  %1584 = vperm.xlu0 %2807, %v3368_v46  }
 0x6e0   :  { %1566 = vperm.xlu1 %2806, %v3364_v13   ;;  %2810 = vset.pattern.permute.xlu0 %v2942_v42 }
 0x6e1   :  { %1610 = vperm.xlu0 %2810, %v3364_v13  }
 0x6e4   :  { %2808 = vset.pattern.permute.xlu1 %v2941_v41  ;;  %v1906_v41 = vpop.permute.xlu1 %1905 }
 0x6e5   :  { %1588 = vperm.xlu1 %2808, %v3364_v13   ;;  %2812 = vset.pattern.permute.xlu0 %v3629_v27  ;;  %v1913_v62 = vadd.f32 %v1911_v2, %v1906_v41  ;;  %v1934_v41 = vadd.f32 %v1933_v6, %v1924_v16 }
 0x6e6   :  { %1650 = vperm.xlu0 %2812, %v3368_v46  }
 0x6e7   :  { %v1936_v26 = vmax.f32 %v1934_v41, 0.0 }
 0x6e9   :  { %2809 = vset.pattern.permute.xlu1 %v2942_v42  ;;  %v1928_v42 = vpop.permute.xlu1 %1927 }
 0x6ea   :  { %1606 = vperm.xlu1 %2809, %v3368_v46   ;;  %2814 = vset.pattern.permute.xlu0 %v2940_v40  ;;  %v1935_v31 = vadd.f32 %v1933_v6, %v1928_v42  ;;  %v1977_v42 = vrot.slane %v3374_v1, %v3234_v10 }
 0x6eb   :  { %1677 = vperm.xlu0 %2814, %v2656_v22  }
 0x6ec   :  { %v1937_v7 = vmax.f32 %v1935_v31, 0.0 }
 0x6ed   :  { %v1814_v44 = vpop.permute.xlu1 %1813 }
 0x6ee   :  { %2811 = vset.pattern.permute.xlu1 %v3630_v30 }
 0x6ef   :  { %1628 = vperm.xlu1 %2811, %v3368_v46   ;;  %v1830_v46 = vmul.f32 %v1828_v36, %v1827_v47  ;;  %v1940_v47 = vmul.f32 %v1938_v28, %v1937_v7 }
 0x6f1   :  { %v1880_v38 = vpop.permute.xlu1 %1879  ;;  %v1854_v30 = vadd.f32 %v1852_v34, %v1830_v46  ;;  %v1960_v34 = vstv %s3483_s14 }
 0x6f2   :  { %v1890_v9 = vadd.f32 %v1889_v14, %v1880_v38  ;;  %v1915_v38 = vmax.f32 %v1913_v62, 0.0 }
 0x6f3   :  { %1632 = vperm.xlu1 %2811, %v3364_v13   ;;  %v1876_v60 = vadd.f32 %v1874_v23, %v1854_v30 }
 0x6f5   :  { %v1902_v3 = vpop.permute.xlu1 %1901 }
 0x6f6   :  { %v1912_v55 = vadd.f32 %v1911_v2, %v1902_v3  ;;  %v1950_v3 = vpop.permute.xlu0 %1949 }
 0x6f7   :  { %2813 = vset.pattern.permute.xlu1 %v3629_v27  ;;  %v1893_v27 = vmax.f32 %v1891_v43, 0.0  ;;  %v1957_v29 = vadd.f32 %v1955_v51, %v1950_v3  ;;  %v1939_v43 = vmul.f32 %v1938_v28, %v1936_v26  ;;  %v1550_v26 = vrot.slane %v3376_v59, %v3193_v58 }
 0x6f8   :  { %1654 = vperm.xlu1 %2813, %v3364_v13  }
 0x6f9   :  { %v1946_v21 = vpop.permute.xlu1 %1945  ;;  %v1896_v52 = vmul.f32 %v1894_v32, %v1893_v27 }
 0x6fa   :  { %v1956_v17 = vadd.f32 %v1955_v51, %v1946_v21  ;;  %v1982_v21 = vstv %s2523_s18 }
 0x6fb   :  { %v1898_v18 = vadd.f32 %v1896_v52, %v1876_v60 }
 0x6fc   :  { %2815 = vset.pattern.permute.xlu1 %v2940_v40  ;;  %v1824_v40 = vadd.f32 %v1823_v11, %v1814_v44  ;;  %v1914_v44 = vmax.f32 %v1912_v55, 0.0  ;;  %v1916_v11 = vstv %s3471_s16  ;;  %v1958_v45 = vmax.f32 %v1956_v17, 0.0 }
 0x6fd   :  { %1672 = vperm.xlu1 %2815, %v1485_v24   ;;  %v1968_v13 = vpop.permute.xlu1 %1967  ;;  %v1892_v24 = vmax.f32 %v1890_v9, 0.0 }
 0x6fe   :  { %v1826_v33 = vmax.f32 %v1824_v40, 0.0  ;;  %v1917_v53 = vmul.f32 %v1916_v11, %v1914_v44  ;;  %v1961_v16 = vmul.f32 %v1960_v34, %v1958_v45 }
 0x6ff   :  { %v1895_v40 = vmul.f32 %v1894_v32, %v1892_v24 }
 0x700   :  { %v1829_v8 = vmul.f32 %v1828_v36, %v1826_v33  ;;  %v1918_v33 = vmul.f32 %v1916_v11, %v1915_v38  ;;  %v1978_v36 = vadd.f32 %v1977_v42, %v1968_v13  ;;  %v1998_v13 = vrot.slane %v3424_v5, %v3183_v54 }
 0x701   :  { %v1972_v15 = vpop.permute.xlu1 %1971 }
 0x702   :  { %v1853_v22 = vadd.f32 %v1851_v0, %v1829_v8  ;;  %v1979_v14 = vadd.f32 %v1977_v42, %v1972_v15  ;;  %v1920_v2 = vadd.f32 %v1918_v33, %v1898_v18  ;;  %v1959_v8 = vmax.f32 %v1957_v29, 0.0 }
 0x703   :  { %v1980_v1 = vmax.f32 %v1978_v36, 0.0  ;;  %v1506_v33 = vrot.slane %v3376_v59, %v3186_v56  ;;  %v1528_v29 = vrot.slane %v3376_v59, %v3183_v54  ;;  %v1511_v54 = vstv %s3501_s19 }
 0x704   :  { %v1875_v61 = vadd.f32 %v1873_v39, %v1853_v22  ;;  %v1981_v9 = vmax.f32 %v1979_v14, 0.0  ;;  %v1942_v0 = vadd.f32 %v1940_v47, %v1920_v2  ;;  %v1962_v55 = vmul.f32 %v1960_v34, %v1959_v8 }
 0x705   :  { %v1983_v23 = vmul.f32 %v1982_v21, %v1980_v1  ;;  %v1572_v47 = vrot.slane %v3376_v59, %v3200_v63 }
 0x706   :  { %v1897_v35 = vadd.f32 %v1895_v40, %v1875_v61  ;;  %v1984_v46 = vmul.f32 %v1982_v21, %v1981_v9  ;;  %v1964_v62 = vadd.f32 %v1962_v55, %v1942_v0  ;;  %v1533_v9 = vstv %s3503_s20 }
 0x707   :  { %v1555_v21 = vstv %s3509_s21 }
 0x708   :  { %v1919_v49 = vadd.f32 %v1917_v53, %v1897_v35  ;;  %v1986_v22 = vadd.f32 %v1984_v46, %v1964_v62  ;;  %v1616_v46 = vrot.slane %v3376_v59, %v3218_v20 }
 0x70a   :  { %v1941_v25 = vadd.f32 %v1939_v43, %v1919_v49  ;;  %v2004_v39 = vmul.f32 0.8, %v1986_v22 }
 0x70c   :  { %v1963_v6 = vadd.f32 %v1961_v16, %v1941_v25  ;;  %v1594_v25 = vrot.slane %v3376_v59, %v3207_v4 }
 0x70e   :  { %v1985_v24 = vadd.f32 %v1983_v23, %v1963_v6  ;;  %v1577_v6 = vstv %s3513_s22 }
 0x710   :  { %v2003_v60 = vmul.f32 0.8, %v1985_v24 }
 0x748   :  { %v1993_v27 = vpop.permute.xlu1 %1992 }
 0x749   :  { %v2000_v30 = vadd.f32 %v1998_v13, %v1993_v27  ;;  %v1989_v31 = vpop.permute.xlu0 %1988 }
 0x74a   :  { %v1999_v32 = vadd.f32 %v1998_v13, %v1989_v31 }
 0x74b   :  { %v2002_v44 = vmul.f32 0.2, %v2000_v30 }
 0x74c   :  { %v2001_v38 = vmul.f32 0.2, %v1999_v32 }
 0x74d   :  { %v2006_v51 = vadd.f32 %v2004_v39, %v2002_v44  ;;  %v1497_v11 = vpop.permute.xlu1 %1496  ;;  %v1519_v61 = vpop.permute.xlu0 %1518 }
 0x74e   :  { %v2005_v41 = vadd.f32 %v2003_v60, %v2001_v38  ;;  %v1507_v14 = vadd.f32 %v1506_v33, %v1497_v11  ;;  %v1529_v28 = vadd.f32 %v1528_v29, %v1519_v61  ;;  %v1638_v61 = vrot.slane %v3376_v59, %v3223_v50 }
 0x74f   :  { %v3492_v3 = vadd.f32 %v2006_v51, %v3249_v57 }
 0x750   :  { %v3495_v40 = vadd.f32 %v2005_v41, %v3251_v48  ;;  %v1509_v45 = vmax.f32 %v1507_v14, 0.0  ;;  %v1531_v2 = vmax.f32 %v1529_v28, 0.0 }
 0x751   :  { %v1501_v15 = vpop.permute.xlu1 %1500  ;;  %v2012_v52 = vsel %vm373_vm9, %v3492_v3, -inf  ;;  %v1523_v42 = vpop.permute.xlu0 %1522 }
 0x752   :  { %2013 = vmax.xlane.f32.xlu0 %v2012_v52  ;;  %v2009_v7 = vsel %vm373_vm9, %v3495_v40, -inf  ;;  %v1508_v43 = vadd.f32 %v1506_v33, %v1501_v15  ;;  %v1530_v34 = vadd.f32 %v1528_v29, %v1523_v42  ;;  %v1512_v16 = vmul.f32 %v1511_v54, %v1509_v45 }
 0x753   :  { %2010 = vmax.xlane.f32.xlu1 %v2009_v7  ;;  %v1534_v63 = vmul.f32 %v1533_v9, %v1531_v2  ;;  %v1599_v52 = vstv %s3520_s0  ;;  %v1660_v33 = vrot.slane %v3376_v59, %v3234_v10 }
 0x754   :  { %v1510_v23 = vmax.f32 %v1508_v43, 0.0  ;;  %v1532_v62 = vmax.f32 %v1530_v34, 0.0 }
 0x755   :  { %v1536_v39 = vadd.f32 %v1534_v63, %v1512_v16 }
 0x756   :  { %v1541_v53 = vpop.permute.xlu1 %1540  ;;  %v1545_v18 = vpop.permute.xlu0 %1544  ;;  %v1513_v60 = vmul.f32 %v1511_v54, %v1510_v23  ;;  %v1535_v38 = vmul.f32 %v1533_v9, %v1532_v62 }
 0x757   :  { %v1551_v36 = vadd.f32 %v1550_v26, %v1541_v53  ;;  %v1552_v58 = vadd.f32 %v1550_v26, %v1545_v18  ;;  %v1621_v18 = vstv %s3524_s3 }
 0x758   :  { %v1537_v14 = vadd.f32 %v1535_v38, %v1513_v60 }
 0x759   :  { %v1553_v0 = vmax.f32 %v1551_v36, 0.0  ;;  %v1554_v4 = vmax.f32 %v1552_v58, 0.0  ;;  %v1665_v58 = vstv %s3534_s4 }
 0x75b   :  { %v1563_v17 = vpop.permute.xlu1 %1562  ;;  %v1585_v49 = vpop.permute.xlu0 %1584  ;;  %v1556_v24 = vmul.f32 %v1555_v21, %v1553_v0  ;;  %v1557_v15 = vmul.f32 %v1555_v21, %v1554_v4 }
 0x75c   :  { %v1573_v8 = vadd.f32 %v1572_v47, %v1563_v17  ;;  %v1595_v27 = vadd.f32 %v1594_v25, %v1585_v49 }
 0x75d   :  { %v1558_v51 = vadd.f32 %v1556_v24, %v1536_v39  ;;  %v1559_v45 = vadd.f32 %v1557_v15, %v1537_v14 }
 0x75e   :  { %v1575_v55 = vmax.f32 %v1573_v8, 0.0  ;;  %v1597_v11 = vmax.f32 %v1595_v27, 0.0 }
 0x75f   :  { %v1567_v35 = vpop.permute.xlu1 %1566 }
 0x760   :  { %v1574_v22 = vadd.f32 %v1572_v47, %v1567_v35  ;;  %v1611_v13 = vpop.permute.xlu0 %1610  ;;  %v1578_v44 = vmul.f32 %v1577_v6, %v1575_v55  ;;  %v1643_v35 = vstv %s3529_s23  ;;  %v1600_v36 = vmul.f32 %v1599_v52, %v1597_v11 }
 0x761   :  { %v1618_v26 = vadd.f32 %v1616_v46, %v1611_v13 }
 0x762   :  { %v1576_v20 = vmax.f32 %v1574_v22, 0.0  ;;  %v1580_v17 = vadd.f32 %v1578_v44, %v1558_v51 }
 0x764   :  { %v1589_v1 = vpop.permute.xlu1 %1588  ;;  %v1579_v28 = vmul.f32 %v1577_v6, %v1576_v20  ;;  %v1602_v54 = vadd.f32 %v1600_v36, %v1580_v17  ;;  %v1683_v6 = vrot.slane %v3424_v5, %v3186_v56 }
 0x765   :  { %v1596_v31 = vadd.f32 %v1594_v25, %v1589_v1  ;;  %v1651_v42 = vpop.permute.xlu0 %1650  ;;  %v1620_v1 = vmax.f32 %v1618_v26, 0.0 }
 0x766   :  { %v1661_v50 = vadd.f32 %v1660_v33, %v1651_v42  ;;  %v1581_v34 = vadd.f32 %v1579_v28, %v1559_v45 }
 0x767   :  { %v1598_v7 = vmax.f32 %v1596_v31, 0.0  ;;  %v1623_v63 = vmul.f32 %v1621_v18, %v1620_v1 }
 0x768   :  { %v1663_v0 = vmax.f32 %v1661_v50, 0.0 }
 0x769   :  { %v1607_v30 = vpop.permute.xlu1 %1606  ;;  %v1601_v2 = vmul.f32 %v1599_v52, %v1598_v7 }
 0x76a   :  { %v1617_v32 = vadd.f32 %v1616_v46, %v1607_v30  ;;  %v1666_v23 = vmul.f32 %v1665_v58, %v1663_v0  ;;  %v1678_v62 = vpop.permute.xlu0 %1677 }
 0x76b   :  { %v1603_v21 = vadd.f32 %v1601_v2, %v1581_v34  ;;  %v1685_v27 = vadd.f32 %v1683_v6, %v1678_v62 }
 0x76c   :  { %v1619_v41 = vmax.f32 %v1617_v32, 0.0 }
 0x76d   :  { %v1625_v22 = vadd.f32 %v1623_v63, %v1603_v21  ;;  %v1687_v38 = vmul.f32 0.2, %v1685_v27  ;;  %v2218_v63 = vld [vmem:[%s3621_s13] sm:$0xff] }
 0x76e   :  { %v1629_v53 = vpop.permute.xlu1 %1628  ;;  %v1622_v47 = vmul.f32 %v1621_v18, %v1619_v41 }
 0x76f   :  { %v1639_v29 = vadd.f32 %v1638_v61, %v1629_v53 }
 0x770   :  { %v1624_v10 = vadd.f32 %v1622_v47, %v1602_v54 }
 0x771   :  { %v1641_v49 = vmax.f32 %v1639_v29, 0.0 }
 0x772   :  { %v1633_v8 = vpop.permute.xlu1 %1632 }
 0x773   :  { %v1644_v9 = vmul.f32 %v1643_v35, %v1641_v49  ;;  %v1640_v43 = vadd.f32 %v1638_v61, %v1633_v8  ;;  %v2524_v8 = vld [vmem:[%s3617_s9] ss:$0 sm:$0xff] }
 0x775   :  { %v1642_v59 = vmax.f32 %v1640_v43, 0.0  ;;  %v1646_v25 = vadd.f32 %v1644_v9, %v1624_v10 }
 0x777   :  { %v1655_v16 = vpop.permute.xlu1 %1654  ;;  %v1645_v55 = vmul.f32 %v1643_v35, %v1642_v59  ;;  %v1668_v24 = vadd.f32 %v1666_v23, %v1646_v25 }
 0x778   :  { %v1662_v46 = vadd.f32 %v1660_v33, %v1655_v16 }
 0x779   :  { %v1647_v30 = vadd.f32 %v1645_v55, %v1625_v22  ;;  %v1688_v60 = vmul.f32 0.8, %v1668_v24  ;;  %v2219_v55 = vld [vmem:[%s3621_s13 + $0x8] sm:$0xff] }
 0x77a   :  { %v1664_v13 = vmax.f32 %v1662_v46, 0.0  ;;  %v2720_v46 = vpack.c.bf16 %v2219_v55, %v2218_v63 }
 0x77c   :  { %v1667_v4 = vmul.f32 %v1665_v58, %v1664_v13  ;;  %v1673_v31 = vpop.permute.xlu1 %1672  ;;  %2721 = vmatprep.subr.bf16.mxu0 %v2720_v46 }
 0x77d   :  { %v1684_v32 = vadd.f32 %v1683_v6, %v1673_v31 }
 0x77e   :  { %v1669_v39 = vadd.f32 %v1667_v4, %v1647_v30 }
 0x77f   :  { %v1686_v44 = vmul.f32 0.2, %v1684_v32 }
 0x780   :  { %v1689_v20 = vmul.f32 0.8, %v1669_v39 }
 0x781   :  { %v1690_v51 = vadd.f32 %v1688_v60, %v1686_v44 }
 0x782   :  { %v1691_v11 = vadd.f32 %v1689_v20, %v1687_v38 }
 0x783   :  { %v1692_v41 = vadd.f32 %v1690_v51, %v3251_v48 }
 0x784   :  { %v1693_v61 = vadd.f32 %v1691_v11, %v3249_v57  ;;  %v2138_v11 = vld [vmem:[%s3620_s12] sm:$0x1]  ;;  %s2533_s12 = sld [smem:[#allocation9 + $0x1]] }
 0x785   :  { %v1694_v5 = vsel %vm373_vm9, %v1692_v41, -inf }
 0x786   :  { %1695 = vmax.xlane.f32.xlu1 %v1694_v5  ;;  %v1697_v15 = vsel %vm373_vm9, %v1693_v61, -inf }
 0x787   :  { %1698 = vmax.xlane.f32.xlu0 %v1697_v15 }
 0x78a   :  { %v2348_v63 = vstv %s2533_s12 }
 0x7df   :  { %v2014_v52 = vpop.xlane.xlu0 %2013 }
 0x7e0   :  { %v2016_v7 = vsub.f32 %v3492_v3, %v2014_v52  ;;  %v2011_v42 = vpop.xlane.xlu1 %2010 }
 0x7e1   :  { %v2015_v17 = vsub.f32 %v3495_v40, %v2011_v42 }
 0x7e2   :  { %v2019_v53 = vmul.f32 1.442695, %v2016_v7 }
 0x7e3   :  { %v2017_v18 = vmul.f32 1.442695, %v2015_v17 }
 0x7e4   :  { %2832 = vpow2.f32 %v2019_v53 }
 0x7e5   :  { %2834 = vpow2.f32 %v2017_v18 }
 0x7ee   :  { %v2833_v33 = vpop.eup %2832 }
 0x7ef   :  { %v2024_v29 = vsel %vm373_vm9, %v2833_v33, 0.0  ;;  %v2835_v14 = vpop.eup %2834 }
 0x7f0   :  { %2025 = vadd.xlane.f32.xlu0 %v2024_v29  ;;  %v2021_v28 = vsel %vm373_vm9, %v2835_v14, 0.0 }
 0x7f1   :  { %2022 = vadd.xlane.f32.xlu1 %v2021_v28 }
 0x813   :  { %v1696_v26 = vpop.xlane.xlu1 %1695 }
 0x814   :  { %v1700_v35 = vsub.f32 %v1692_v41, %v1696_v26  ;;  %v1699_v36 = vpop.xlane.xlu0 %1698 }
 0x815   :  { %v1701_v50 = vsub.f32 %v1693_v61, %v1699_v36 }
 0x816   :  { %v1702_v3 = vmul.f32 1.442695, %v1700_v35 }
 0x817   :  { %v1704_v47 = vmul.f32 1.442695, %v1701_v50 }
 0x818   :  { %2836 = vpow2.f32 %v1702_v3 }
 0x819   :  { %2838 = vpow2.f32 %v1704_v47 }
 0x822   :  { %v2837_v40 = vpop.eup %2836 }
 0x823   :  { %v2839_v49 = vpop.eup %2838  ;;  %v1706_v45 = vsel %vm373_vm9, %v2837_v40, 0.0 }
 0x824   :  { %1707 = vadd.xlane.f32.xlu1 %v1706_v45  ;;  %v1709_v2 = vsel %vm373_vm9, %v2839_v49, 0.0 }
 0x825   :  { %1710 = vadd.xlane.f32.xlu0 %v1709_v2 }
 0x835   :  { %2037 = vrot.lane.b32.xlu1 %v2524_v8, %s2947_s24 }
 0x87d   :  { %v2026_v54 = vpop.xlane.xlu0 %2025 }
 0x87e   :  { %2840 = vrcp.f32 %v2026_v54  ;;  %v2023_v9 = vpop.xlane.xlu1 %2022 }
 0x87f   :  { %2842 = vrcp.f32 %v2023_v9 }
 0x888   :  { %v2841_v43 = vpop.eup %2840 }
 0x889   :  { %v2843_v34 = vpop.eup %2842  ;;  %v2030_v0 = vmul.f32 %v2841_v43, %v2833_v33 }
 0x88a   :  { %v2029_v1 = vmul.f32 %v2843_v34, %v2835_v14 }
 0x88c   :  { %2664 = vmatprep.mubr.msk.f32.mxu0 %vm373_vm9, %v2029_v1 }
 0x88d   :  { %2665 = vmatmul.mubr.msk.f32.vlgmr.msra.gmra.mrb[10].mxu0 %vm373_vm9, %v2030_v0 }
 0x88e   :  { %2723 = vmatpush3.bf16.msra.mxu0 %v2720_v46 }
 0x88f   :  { %2724 = vmatprep.subr.bf16.mxu0 %v2930_v19 }
 0x8b1   :  { %v1708_v10 = vpop.xlane.xlu1 %1707 }
 0x8b2   :  { %2844 = vrcp.f32 %v1708_v10  ;;  %v1711_v59 = vpop.xlane.xlu0 %1710 }
 0x8b3   :  { %2846 = vrcp.f32 %v1711_v59 }
 0x8b5   :  { %v2038_v23 = vpop.permute.xlu1 %2037 }
 0x8bc   :  { %v2845_v21 = vpop.eup %2844 }
 0x8bd   :  { %v2847_v58 = vpop.eup %2846  ;;  %v1714_v25 = vmul.f32 %v2845_v21, %v2837_v40 }
 0x8be   :  { %v1715_v16 = vmul.f32 %v2847_v58, %v2839_v49 }
 0x8bf   :  { %2659 = vmatprep.mubr.msk.f32.mxu1 %vm373_vm9, %v1714_v25 }
 0x8c0   :  { %2660 = vmatmul.mubr.msk.f32.vlgmr.msra.gmra.mrb[12].mxu1 %vm373_vm9, %v1715_v16 }
 0x8c1   :  { %2671 = vmatprep.mubr.msk.f32.mxu1 %vm2931_vm8, %v2929_v12 }
 0x960   :  { %v2666_v62 = vpop.f32.mrb[10].mxu0 }
 0x961   :  { %v2121_v6 = vadd.f32 %v2666_v62, %v2038_v23  ;;  %v2115_v22 = vpop.f32.mrb[11].mxu0 }
 0x962   :  { %v2116_v13 = vadd.f32 %v2115_v22, %v2038_v23 }
 0x963   :  { %v2125_v24 = vmax.f32 %v2121_v6, 0.0 }
 0x964   :  { %v2124_v27 = vmax.f32 %v2116_v13, 0.0 }
 0x965   :  { %2130 = vrot.lane.b32.xlu1 %v2125_v24, %s2948_s11 }
 0x966   :  { %2128 = vrot.lane.b32.xlu0 %v2124_v27, %s2948_s11  ;;  %s2295_s11 = sld [smem:[#allocation9]] }
 0x96c   :  { %v2321_v26 = vstv %s2295_s11 }
 0x993   :  { %v2661_v30 = vpop.f32.mrb[12].mxu1 }
 0x994   :  { %v1804_v4 = vadd.f32 %v2661_v30, %v2524_v8  ;;  %v1798_v31 = vpop.f32.mrb[13].mxu1 }
 0x995   :  { %v1799_v32 = vadd.f32 %v2524_v8, %v1798_v31 }
 0x996   :  { %v1808_v39 = vmax.f32 %v1804_v4, 0.0 }
 0x997   :  { %v1807_v44 = vmax.f32 %v1799_v32, 0.0 }
 0x998   :  { %1810 = vst.msk [vmem:[#allocation3 + $0x8] sm:$0xff] %vm207_vm0, %v1808_v39 }
 0x999   :  { %1809 = vst.msk [vmem:[#allocation3] sm:$0xff] %vm207_vm0, %v1807_v44 }
 0x9d7   :  { %v2131_v19 = vpop.permute.xlu1 %2130 }
 0x9d8   :  { %2135 = vst.msk [vmem:[#allocation3 + $0x8] sm:$0xff] %vm1168_vm12, %v2131_v19  ;;  %v2129_v60 = vpop.permute.xlu0 %2128 }
 0x9d9   :  { %2134 = vst.msk [vmem:[#allocation3] sm:$0xff] %vm1168_vm12, %v2129_v60 }
 0x9df   :  { %v2137_v38 = vld [vmem:[#allocation3 + $0x8] sm:$0xff] }
 0x9e0   :  { %v2136_v20 = vld [vmem:[#allocation3] sm:$0xff] }
 0x9e1   :  { %v2717_v51 = vpack.c.bf16 %v2137_v38, %v2136_v20  ;;  %2678 = vmatprep.mubr.msk.f32.mxu0 %vm373_vm9, %v2136_v20 }
 0x9e2   :  { %2679 = vmatmul.mubr.msk.f32.vlgmr.msra.gmra.mrb[12].mxu0 %vm373_vm9, %v2137_v38 }
 0x9e3   :  { %2719 = vmatpush3.bf16.xpose.msk.msra.mxu1 %vm3348_vm13, %v2717_v51  ;;  %2685 = vmatprep.mubr.msk.f32.mxu0 %vm2931_vm8, %v2929_v12 }
 0x9ea   :  { %2672 = vmatmul.mubr.msk.f32.vlgmr.msra.gmra.mrb[14].mxu1 %vm373_vm9, %v2138_v11 }
 0xab5   :  { %v2680_v41 = vpop.f32.mrb[12].mxu0 }
 0xab6   :  { %2304 = vperm.xlu0 %2814, %v2680_v41   ;;  %v2286_v61 = vpop.f32.mrb[13].mxu0 }
 0xab7   :  { %2299 = vperm.xlu1 %2815, %v2286_v61  }
 0xabd   :  { %v2214_v5 = vpop.f32.mrb[14].mxu1 }
 0xabe   :  { %v2673_v15 = vpop.f32.mrb[15].mxu1  ;;  %v2310_v52 = vrot.slane %v2214_v5, %v3186_v56 }
 0xb35   :  { %v2305_v7 = vpop.permute.xlu0 %2304 }
 0xb36   :  { %v2312_v42 = vadd.f32 %v2310_v52, %v2305_v7  ;;  %v2300_v53 = vpop.permute.xlu1 %2299 }
 0xb37   :  { %v2311_v17 = vadd.f32 %v2310_v52, %v2300_v53 }
 0xb38   :  { %v2316_v12 = vmax.f32 %v2312_v42, 0.0  ;;  %v2314_v33 = vmul.f32 0.2, %v2312_v42 }
 0xb39   :  { %v2315_v18 = vmax.f32 %v2311_v17, 0.0  ;;  %v2313_v14 = vmul.f32 0.2, %v2311_v17 }
 0xb3a   :  { %v2318_v29 = vmul.f32 0.8, %v2316_v12 }
 0xb3b   :  { %v2317_v28 = vmul.f32 0.8, %v2315_v18 }
 0xb3c   :  { %v2320_v35 = vadd.f32 %v2318_v29, %v2314_v33 }
 0xb3d   :  { %v2319_v36 = vadd.f32 %v2317_v28, %v2313_v14 }
 0xb3e   :  { %v2323_v50 = vmul.f32 %v2321_v26, %v2320_v35 }
 0xb3f   :  { %v2322_v3 = vmul.f32 %v2321_v26, %v2319_v36 }
 0xb40   :  { %v2325_v47 = vadd.f32 %v2323_v50, %v3249_v57 }
 0xb41   :  { %v2324_v56 = vadd.f32 %v2322_v3, %v3251_v48 }
 0xb42   :  { %v2329_v40 = vsel %vm373_vm9, %v2325_v47, -inf }
 0xb43   :  { %2330 = vmax.xlane.f32.xlu0 %v2329_v40  ;;  %v2326_v49 = vsel %vm373_vm9, %v2324_v56, -inf }
 0xb44   :  { %2327 = vmax.xlane.f32.xlu1 %v2326_v49 }
 0xbd0   :  { %v2331_v45 = vpop.xlane.xlu0 %2330 }
 0xbd1   :  { %v2333_v2 = vsub.f32 %v2325_v47, %v2331_v45  ;;  %v2328_v8 = vpop.xlane.xlu1 %2327 }
 0xbd2   :  { %v2332_v54 = vsub.f32 %v2324_v56, %v2328_v8 }
 0xbd3   :  { %v2336_v9 = vmul.f32 1.442695, %v2333_v2 }
 0xbd4   :  { %v2334_v43 = vmul.f32 1.442695, %v2332_v54 }
 0xbd5   :  { %2848 = vpow2.f32 %v2336_v9 }
 0xbd6   :  { %2850 = vpow2.f32 %v2334_v43 }
 0xbdf   :  { %v2849_v34 = vpop.eup %2848 }
 0xbe0   :  { %v2851_v1 = vpop.eup %2850  ;;  %v2341_v57 = vsel %vm373_vm9, %v2849_v34, 0.0 }
 0xbe1   :  { %2342 = vadd.xlane.f32.xlu1 %v2341_v57  ;;  %v2338_v48 = vsel %vm373_vm9, %v2851_v1, 0.0 }
 0xbe2   :  { %2339 = vadd.xlane.f32.xlu0 %v2338_v48 }
 0xc6e   :  { %v2343_v0 = vpop.xlane.xlu1 %2342 }
 0xc6f   :  { %2852 = vrcp.f32 %v2343_v0  ;;  %v2340_v10 = vpop.xlane.xlu0 %2339 }
 0xc70   :  { %2854 = vrcp.f32 %v2340_v10 }
 0xc79   :  { %v2853_v59 = vpop.eup %2852 }
 0xc7a   :  { %v2855_v21 = vpop.eup %2854  ;;  %v2347_v58 = vmul.f32 %v2853_v59, %v2849_v34 }
 0xc7b   :  { %v2346_v25 = vmul.f32 %v2855_v21, %v2851_v1 }
 0xc7d   :  { %v2725_v16 = vpack.c.bf16 %v2347_v58, %v2346_v25 }
 0xc7f   :  { %2727 = vmatpush3.bf16.xpose.msk.msra.mxu0 %vm3348_vm13, %v2725_v16 }
 0xc86   :  { %2686 = vmatmul.mubr.msk.f32.vlgmr.msra.gmra.mrb[14].mxu0 %vm373_vm9, %v2214_v5 }
 0xd59   :  { %v2424_v55 = vpop.f32.mrb[14].mxu0 }
 0xd5a   :  { %v2425_v46 = vadd.f32 %v2424_v55, %v2348_v63  ;;  %v2687_v23 = vpop.f32.mrb[15].mxu0 }
 0xd5c   :  { %v2428_v62 = vsub.f32 0.0, %v2425_v46 }
 0xd5e   :  { %v2429_v6 = vmul.f32 1.442695, %v2428_v62 }
 0xd60   :  { %2856 = vpow2.f32 %v2429_v6 }
 0xd6a   :  { %v2857_v22 = vpop.eup %2856 }
 0xd6b   :  { %v2431_v13 = vadd.f32 1.0, %v2857_v22 }
 0xd6d   :  { %2858 = vrcp.f32 %v2431_v13 }
 0xd77   :  { %v2859_v24 = vpop.eup %2858 }
 0xd78   :  { %2435 = vst.msk [vmem:[#allocation10] sm:$0x1] %vm2434_vm14, %v2859_v24 }
 0xd79   :  { %2907 = shalt.err (!%p2904_p5)
}
 0xd7a   :  { %s2908_s29 = scalar_lea.hbm %s3623_s15, 16 }
 0xd7b   :  { %p2909_p6 = scmp.ne.s32.totalorder %s3623_s15, %s2908_s29  ;;  %p2912_p7 = scmp.lt.u32.totalorder %s2908_s29, %s3623_s15 }
 0xd7d   :  { %p2914_p8 = pnand %p2912_p7, %p2909_p6 }
 0xd7f   :  { %2917 = shalt.err (!%p2914_p8)
}
 0xd80   :  { %2445 = dma.vmem_to_hbm [thread:$0]  %s2443_s6, 16, %s3623_s15, [#allocation5]  }
 0xd81   :  { %2922 = dma.done.wait [#allocation5], 16  }
 0xd82   :  { %2923 = vsyncadd [#allocation5], 4294967280 }
 0xd83   :  { %2449 = vsyncpa [#allocation5], 1 }
 0xd84   :  { %2450 = vsyncpa [#allocation6], 1 }
 0xd85   :  { %2451 = vsyncpa [#allocation8], 1 }

</bundles_post_ra>
